<compile_context>
chip_gen: v7x
topology: tpu7x:2x2x1
jax: 0.10.0
libtpu: 0.0.40
codegen_flags: <defaults>
</compile_context>

<pallas_src>
import functools
import math

import jax
import jax.numpy as jnp
from jax.experimental import pallas as pl

# ---------------- small deterministic config ----------------
VOCAB = 100
MAX_POS = 16
TYPE_VOCAB = 2
HIDDEN = 32            # bert hidden_size (scaled down)
N_LAYERS = 2
N_HEADS = 4
D_HEAD = HIDDEN // N_HEADS
INTERMEDIATE = 64
NUM_CLASSES = 3
CLS_PAD = 128          # lane-dense padded classifier output width
WCE_VOCAB = 50
WCE_DIM = 16
BATCH = 2
SEQ = 8
VEC_PAD = 128          # lane padding for packed bias / LN vectors
BERT_LN_EPS = 1e-12    # HF BertModel layer_norm_eps
WCE_LN_EPS = 1e-5      # nn.LayerNorm default in wce_projection


# ---------------- in-kernel helpers (operate on values, not refs) ----------------
def _layernorm(x, g, b, eps):
    mean = jnp.mean(x, axis=-1, keepdims=True)
    var = jnp.mean((x - mean) ** 2, axis=-1, keepdims=True)
    return (x - mean) * jax.lax.rsqrt(var + eps) * g + b


def _gelu_exact(x):
    # exact (erf) GELU as used by BERT
    return 0.5 * x * (1.0 + jax.lax.erf(x * (1.0 / math.sqrt(2.0))))


# ---------------- single fused BERT-classifier kernel ----------------
def _fused_bert_kernel(x_ref, mask_ref, wce_ref,
                       wqkv_ref, wo_ref, wi_ref, wf_ref,
                       lvec_ref, mvec_ref, tw_ref, wc_ref,
                       o_ref, *,
                       batch, seq, seq_w, n_heads, d_head,
                       n_layers, hidden, inter, wce_dim,
                       bert_eps, wce_eps):
    H = hidden
    mv = mvec_ref[...]                                    # (8, 128) packed misc vectors

    # --- BertEmbeddings LayerNorm (embedding gathers happen in XLA glue) ---
    x = _layernorm(x_ref[...], mv[0:1, :H], mv[1:2, :H], bert_eps)   # (B*S, H)
    mask = mask_ref[...]                                  # (B, 1, S) additive mask

    # --- encoder layers: statically unrolled, all weights resident in VMEM ---
    for l in range(n_layers):
        lv = lvec_ref[l]                                  # (8, 128) this layer's vectors
        b_qkv = lv[0:1, :3 * H]
        b_o = lv[1:2, :H]
        ln1_g, ln1_b = lv[2:3, :H], lv[3:4, :H]
        b_i = lv[4:5, :inter]
        b_f = lv[5:6, :H]
        ln2_g, ln2_b = lv[6:7, :H], lv[7:8, :H]

        # fused QKV projection; 1/sqrt(d_head) already folded into the W_q columns
        qkv = jnp.dot(x, wqkv_ref[l], preferred_element_type=jnp.float32) + b_qkv  # (B*S, 3H)

        # per-head attention, batched over the batch dim with 3-D einsums
        ctx_heads = []
        for h in range(n_heads):
            q = qkv[:, h * d_head:(h + 1) * d_head].reshape(batch, seq, d_head)
            k = qkv[:, H + h * d_head:H + (h + 1) * d_head].reshape(batch, seq, d_head)
            v = qkv[:, 2 * H + h * d_head:2 * H + (h + 1) * d_head].reshape(batch, seq, d_head)
            s = jnp.einsum('bqd,bkd->bqk', q, k,
                           preferred_element_type=jnp.float32) + mask          # (B, S, S)
            s = s - jnp.max(s, axis=-1, keepdims=True)
            p = jnp.exp(s)
            p = p * pl.reciprocal(jnp.sum(p, axis=-1, keepdims=True), approx=False)
            ctx = jnp.einsum('bqk,bkd->bqd', p, v,
                             preferred_element_type=jnp.float32)                # (B, S, Dh)
            ctx_heads.append(ctx.reshape(batch * seq, d_head))
        ctx_all = jnp.concatenate(ctx_heads, axis=-1)                           # (B*S, H)

        # single output projection + residual + LN1, once for all (B*S) rows
        attn = jnp.dot(ctx_all, wo_ref[l], preferred_element_type=jnp.float32) + b_o
        y = _layernorm(attn + x, ln1_g, ln1_b, bert_eps)

        # FFN (exact-erf GELU) + residual + LN2, once for all (B*S) rows
        hmid = _gelu_exact(
            jnp.dot(y, wi_ref[l], preferred_element_type=jnp.float32) + b_i)
        ffn = jnp.dot(hmid, wf_ref[l], preferred_element_type=jnp.float32) + b_f
        x = _layernorm(ffn + y, ln2_g, ln2_b, bert_eps)

    # --- BERT pooler: tanh(W @ h[:, 0] + b); CLS rows sliced in-kernel ---
    cls = jnp.concatenate([x[b * seq:b * seq + 1, :] for b in range(batch)], axis=0)  # (B, H)
    pooler_w = tw_ref[0:H, :]                                                   # (H, H)
    pooled = jnp.tanh(
        jnp.dot(cls, pooler_w, preferred_element_type=jnp.float32) + mv[2:3, :H])

    # --- WCE projection: Linear -> ReLU -> Linear -> LayerNorm -> mean over seq ---
    wce_w1 = tw_ref[H:H + wce_dim, :]                                           # (Dw, H)
    wce_w2 = tw_ref[H + wce_dim:H + wce_dim + H, :]                             # (H, H)
    hw = jnp.dot(wce_ref[...], wce_w1, preferred_element_type=jnp.float32) + mv[3:4, :H]
    hw = jnp.maximum(hw, 0.0)
    hw = jnp.dot(hw, wce_w2, preferred_element_type=jnp.float32) + mv[4:5, :H]
    hw = _layernorm(hw, mv[5:6, :H], mv[6:7, :H], wce_eps)
    wce_mean = jnp.concatenate(
        [jnp.sum(hw[b * seq_w:(b + 1) * seq_w, :], axis=0, keepdims=True)
         for b in range(batch)], axis=0) * (1.0 / seq_w)                        # (B, H)

    # --- combine + classifier (dropout in eval mode is the identity) ---
    combined = pooled + wce_mean
    o_ref[...] = (jnp.dot(combined, wc_ref[...], preferred_element_type=jnp.float32)
                  + mv[7:8, :])                                                 # (B, 128)


# ---------------- deterministic parameter init (packed / stacked layout) ----------------
def _pack_rows(vecs, width=VEC_PAD):
    rows = []
    for v in vecs:
        rows.append(jnp.zeros((width,), jnp.float32).at[:v.shape[0]].set(v))
    return jnp.stack(rows, axis=0)


def init_params(key):
    ks = iter(jax.random.split(key, 64))

    def n(shape):
        return jax.random.normal(next(ks), shape, jnp.float32) * 0.02

    scale = 1.0 / math.sqrt(D_HEAD)

    p = {
        "word_emb": n((VOCAB, HIDDEN)),
        "pos_emb": n((MAX_POS, HIDDEN)),
        "type_emb": n((TYPE_VOCAB, HIDDEN)),
    }
    emb_ln_g = jnp.ones((HIDDEN,), jnp.float32)
    emb_ln_b = jnp.zeros((HIDDEN,), jnp.float32)

    wqkv_l, wo_l, wi_l, wf_l, lvec_l = [], [], [], [], []
    for _ in range(N_LAYERS):
        wq, wk, wv = n((HIDDEN, HIDDEN)), n((HIDDEN, HIDDEN)), n((HIDDEN, HIDDEN))
        # fold the 1/sqrt(d_head) attention scale into W_q (and the q-bias)
        wqkv_l.append(jnp.concatenate([wq * scale, wk, wv], axis=1))     # (H, 3H)
        b_qkv = jnp.zeros((3 * HIDDEN,), jnp.float32).at[:HIDDEN].multiply(scale)
        wo_l.append(n((HIDDEN, HIDDEN)))
        wi_l.append(n((HIDDEN, INTERMEDIATE)))
        wf_l.append(n((INTERMEDIATE, HIDDEN)))
        lvec_l.append(_pack_rows([
            b_qkv,                                  # row 0: b_qkv (3H)
            jnp.zeros((HIDDEN,), jnp.float32),      # row 1: b_o
            jnp.ones((HIDDEN,), jnp.float32),       # row 2: ln1_g
            jnp.zeros((HIDDEN,), jnp.float32),      # row 3: ln1_b
            jnp.zeros((INTERMEDIATE,), jnp.float32),  # row 4: b_inter
            jnp.zeros((HIDDEN,), jnp.float32),      # row 5: b_ffn
            jnp.ones((HIDDEN,), jnp.float32),       # row 6: ln2_g
            jnp.zeros((HIDDEN,), jnp.float32),      # row 7: ln2_b
        ]))
    p["w_qkv"] = jnp.stack(wqkv_l, axis=0)          # (L, H, 3H)
    p["w_o"] = jnp.stack(wo_l, axis=0)              # (L, H, H)
    p["w_inter"] = jnp.stack(wi_l, axis=0)          # (L, H, I)
    p["w_ffn"] = jnp.stack(wf_l, axis=0)            # (L, I, H)
    p["layer_vecs"] = jnp.stack(lvec_l, axis=0)     # (L, 8, 128)

    pooler_w = n((HIDDEN, HIDDEN))
    p["wce_emb"] = n((WCE_VOCAB, WCE_DIM))
    wce_w1 = n((WCE_DIM, HIDDEN))
    wce_w2 = n((HIDDEN, HIDDEN))
    p["tail_w32"] = jnp.concatenate([pooler_w, wce_w1, wce_w2], axis=0)  # (H+Dw+H, H)

    # classifier zero-padded to a lane-dense 128-wide output slab; real logits
    # live in columns [:NUM_CLASSES].
    wc = n((HIDDEN, NUM_CLASSES))
    p["classifier_w"] = jnp.zeros((HIDDEN, CLS_PAD), jnp.float32).at[:, :NUM_CLASSES].set(wc)

    p["misc_vecs"] = _pack_rows([
        emb_ln_g,                                   # row 0
        emb_ln_b,                                   # row 1
        jnp.zeros((HIDDEN,), jnp.float32),          # row 2: pooler_b
        jnp.zeros((HIDDEN,), jnp.float32),          # row 3: wce_b1
        jnp.zeros((HIDDEN,), jnp.float32),          # row 4: wce_b2
        jnp.ones((HIDDEN,), jnp.float32),           # row 5: wce_ln_g
        jnp.zeros((HIDDEN,), jnp.float32),          # row 6: wce_ln_b
        jnp.zeros((CLS_PAD,), jnp.float32),         # row 7: classifier_b (padded)
    ])
    return p


# ---------------- forward pass ----------------
def bert_classifier_forward(params, input_ids, attention_mask, token_ids):
    B, S = input_ids.shape
    # BERT embeddings (gathers are XLA glue; token_type_ids default to zeros,
    # matching HF BertModel when they are not passed)
    word = jnp.take(params["word_emb"], input_ids, axis=0)                  # (B,S,H)
    pos = params["pos_emb"][:S][None, :, :]                                 # (1,S,H)
    typ = jnp.take(params["type_emb"], jnp.zeros_like(input_ids), axis=0)   # (B,S,H)
    x_emb = (word + pos + typ).reshape(B * S, HIDDEN)

    # extended additive attention mask, HF convention: (1 - mask) * -10000
    mask_add = ((1.0 - attention_mask.astype(jnp.float32)) * -10000.0)[:, None, :]  # (B,1,S)

    # WCE embedding gather (XLA glue)
    Sw = token_ids.shape[1]
    wce = jnp.take(params["wce_emb"], token_ids, axis=0).reshape(B * Sw, WCE_DIM)

    kernel = functools.partial(
        _fused_bert_kernel,
        batch=B, seq=S, seq_w=Sw, n_heads=N_HEADS, d_head=D_HEAD,
        n_layers=N_LAYERS, hidden=HIDDEN, inter=INTERMEDIATE, wce_dim=WCE_DIM,
        bert_eps=BERT_LN_EPS, wce_eps=WCE_LN_EPS)

    logits_pad = pl.pallas_call(
        kernel,
        out_shape=jax.ShapeDtypeStruct((B, CLS_PAD), jnp.float32),
    )(x_emb, mask_add, wce,
      params["w_qkv"], params["w_o"], params["w_inter"], params["w_ffn"],
      params["layer_vecs"], params["misc_vecs"],
      params["tail_w32"], params["classifier_w"])

    return logits_pad[:, :NUM_CLASSES]


if __name__ == "__main__":
    params = init_params(jax.random.PRNGKey(42))

    key = jax.random.PRNGKey(0)
    k_ids, k_tok = jax.random.split(key, 2)
    input_ids = jax.random.randint(k_ids, (BATCH, SEQ), 0, VOCAB, dtype=jnp.int32)
    # batch 0 fully attended, batch 1 has 2 padded positions
    lengths = jnp.array([SEQ, SEQ - 2], dtype=jnp.int32)
    attention_mask = (jnp.arange(SEQ)[None, :] < lengths[:, None]).astype(jnp.int32)
    token_ids = jax.random.randint(k_tok, (BATCH, SEQ), 0, WCE_VOCAB, dtype=jnp.int32)

    fwd = jax.jit(bert_classifier_forward)
    logits = fwd(params, input_ids, attention_mask, token_ids)
    logits = jax.block_until_ready(logits)
    assert logits.shape == (BATCH, NUM_CLASSES) and logits.dtype == jnp.float32
    assert bool(jnp.all(jnp.isfinite(logits)))
    print("KERNEL_OK")
</pallas_src>

<mosaic_0001>
module attributes {stable_mosaic.version = 11 : i64} {
  func.func @_fused_bert_kernel(%arg0: memref<16x32xf32, #tpu.memory_space<vmem>>, %arg1: memref<2x1x8xf32, #tpu.memory_space<vmem>>, %arg2: memref<16x16xf32, #tpu.memory_space<vmem>>, %arg3: memref<2x32x96xf32, #tpu.memory_space<vmem>>, %arg4: memref<2x32x32xf32, #tpu.memory_space<vmem>>, %arg5: memref<2x32x64xf32, #tpu.memory_space<vmem>>, %arg6: memref<2x64x32xf32, #tpu.memory_space<vmem>>, %arg7: memref<2x8x128xf32, #tpu.memory_space<vmem>>, %arg8: memref<8x128xf32, #tpu.memory_space<vmem>>, %arg9: memref<80x32xf32, #tpu.memory_space<vmem>>, %arg10: memref<32x128xf32, #tpu.memory_space<vmem>>, %arg11: memref<2x128xf32, #tpu.memory_space<vmem>>) attributes {dimension_semantics = [], scalar_prefetch = 0 : i64, scratch_operands = 0 : i64, tpu.core_type = #tpu.core_type<tc>} {
    %c0 = arith.constant 0 : index
    %c0_0 = arith.constant 0 : index
    %0 = vector.load %arg8[%c0, %c0_0] : memref<8x128xf32, #tpu.memory_space<vmem>>, vector<8x128xf32>
    %c0_1 = arith.constant 0 : index
    %c0_2 = arith.constant 0 : index
    %1 = vector.load %arg0[%c0_1, %c0_2] : memref<16x32xf32, #tpu.memory_space<vmem>>, vector<16x32xf32>
    %2 = vector.extract_strided_slice %0 {offsets = [0, 0], sizes = [1, 32], strides = [1, 1]} : vector<8x128xf32> to vector<1x32xf32>
    %3 = vector.extract_strided_slice %0 {offsets = [1, 0], sizes = [1, 32], strides = [1, 1]} : vector<8x128xf32> to vector<1x32xf32>
    %cst = arith.constant dense<0.000000e+00> : vector<16xf32>
    %4 = vector.multi_reduction <add>, %1, %cst [1] : vector<16x32xf32> to vector<16xf32>
    %5 = vector.shape_cast %4 : vector<16xf32> to vector<16x1xf32>
    %cst_3 = arith.constant 3.200000e+01 : f32
    %6 = vector.broadcast %cst_3 : f32 to vector<16x1xf32>
    %7 = arith.divf %5, %6 : vector<16x1xf32>
    %8 = vector.broadcast %7 : vector<16x1xf32> to vector<16x32xf32>
    %9 = arith.subf %1, %8 : vector<16x32xf32>
    %10 = arith.mulf %9, %9 : vector<16x32xf32>
    %cst_4 = arith.constant dense<0.000000e+00> : vector<16xf32>
    %11 = vector.multi_reduction <add>, %10, %cst_4 [1] : vector<16x32xf32> to vector<16xf32>
    %12 = vector.shape_cast %11 : vector<16xf32> to vector<16x1xf32>
    %cst_5 = arith.constant 3.200000e+01 : f32
    %13 = vector.broadcast %cst_5 : f32 to vector<16x1xf32>
    %14 = arith.divf %12, %13 : vector<16x1xf32>
    %15 = vector.broadcast %7 : vector<16x1xf32> to vector<16x32xf32>
    %16 = arith.subf %1, %15 : vector<16x32xf32>
    %cst_6 = arith.constant 9.99999996E-13 : f32
    %17 = vector.broadcast %cst_6 : f32 to vector<16x1xf32>
    %18 = arith.addf %14, %17 : vector<16x1xf32>
    %19 = math.rsqrt %18 : vector<16x1xf32>
    %20 = vector.broadcast %19 : vector<16x1xf32> to vector<16x32xf32>
    %21 = arith.mulf %16, %20 : vector<16x32xf32>
    %22 = vector.broadcast %2 : vector<1x32xf32> to vector<16x32xf32>
    %23 = arith.mulf %21, %22 : vector<16x32xf32>
    %24 = vector.broadcast %3 : vector<1x32xf32> to vector<16x32xf32>
    %25 = arith.addf %23, %24 : vector<16x32xf32>
    %c0_7 = arith.constant 0 : index
    %c0_8 = arith.constant 0 : index
    %c0_9 = arith.constant 0 : index
    %26 = vector.load %arg1[%c0_7, %c0_8, %c0_9] : memref<2x1x8xf32, #tpu.memory_space<vmem>>, vector<2x1x8xf32>
    %c0_10 = arith.constant 0 : index
    %c0_11 = arith.constant 0 : index
    %c0_12 = arith.constant 0 : index
    %27 = vector.load %arg7[%c0_10, %c0_11, %c0_12] : memref<2x8x128xf32, #tpu.memory_space<vmem>>, vector<1x8x128xf32>
    %28 = vector.shape_cast %27 : vector<1x8x128xf32> to vector<8x128xf32>
    %29 = vector.extract_strided_slice %28 {offsets = [0, 0], sizes = [1, 96], strides = [1, 1]} : vector<8x128xf32> to vector<1x96xf32>
    %30 = vector.extract_strided_slice %28 {offsets = [1, 0], sizes = [1, 32], strides = [1, 1]} : vector<8x128xf32> to vector<1x32xf32>
    %31 = vector.extract_strided_slice %28 {offsets = [2, 0], sizes = [1, 32], strides = [1, 1]} : vector<8x128xf32> to vector<1x32xf32>
    %32 = vector.extract_strided_slice %28 {offsets = [3, 0], sizes = [1, 32], strides = [1, 1]} : vector<8x128xf32> to vector<1x32xf32>
    %33 = vector.extract_strided_slice %28 {offsets = [4, 0], sizes = [1, 64], strides = [1, 1]} : vector<8x128xf32> to vector<1x64xf32>
    %34 = vector.extract_strided_slice %28 {offsets = [5, 0], sizes = [1, 32], strides = [1, 1]} : vector<8x128xf32> to vector<1x32xf32>
    %35 = vector.extract_strided_slice %28 {offsets = [6, 0], sizes = [1, 32], strides = [1, 1]} : vector<8x128xf32> to vector<1x32xf32>
    %36 = vector.extract_strided_slice %28 {offsets = [7, 0], sizes = [1, 32], strides = [1, 1]} : vector<8x128xf32> to vector<1x32xf32>
    %c0_13 = arith.constant 0 : index
    %c0_14 = arith.constant 0 : index
    %c0_15 = arith.constant 0 : index
    %37 = vector.load %arg3[%c0_13, %c0_14, %c0_15] : memref<2x32x96xf32, #tpu.memory_space<vmem>>, vector<1x32x96xf32>
    %38 = vector.shape_cast %37 : vector<1x32x96xf32> to vector<32x96xf32>
    %cst_16 = arith.constant dense<0.000000e+00> : vector<16x96xf32>
    %39 = tpu.matmul %25, %38, %cst_16 {dimension_numbers = #tpu.dot_dimension_numbers<[1], [0], [0], [1], [0, 0, 1, 1], [], []>} : vector<16x32xf32>, vector<32x96xf32>, vector<16x96xf32> -> vector<16x96xf32>
    %40 = vector.broadcast %29 : vector<1x96xf32> to vector<16x96xf32>
    %41 = arith.addf %39, %40 : vector<16x96xf32>
    %42 = vector.extract_strided_slice %41 {offsets = [0, 0], sizes = [16, 8], strides = [1, 1]} : vector<16x96xf32> to vector<16x8xf32>
    %43 = vector.shape_cast %42 : vector<16x8xf32> to vector<2x8x8xf32>
    %44 = vector.extract_strided_slice %41 {offsets = [0, 32], sizes = [16, 8], strides = [1, 1]} : vector<16x96xf32> to vector<16x8xf32>
    %45 = vector.shape_cast %44 : vector<16x8xf32> to vector<2x8x8xf32>
    %46 = vector.extract_strided_slice %41 {offsets = [0, 64], sizes = [16, 8], strides = [1, 1]} : vector<16x96xf32> to vector<16x8xf32>
    %47 = vector.shape_cast %46 : vector<16x8xf32> to vector<2x8x8xf32>
    "tpu.trace_start"() <{level = 10 : i32, message = "bqd,bkd->bqk"}> : () -> ()
    %cst_17 = arith.constant dense<0.000000e+00> : vector<2x8x8xf32>
    %48 = tpu.matmul %43, %45, %cst_17 {dimension_numbers = #tpu.dot_dimension_numbers<[2], [2], [1], [1], [0, 0, 0, 1, 1, 1], [0], [0]>} : vector<2x8x8xf32>, vector<2x8x8xf32>, vector<2x8x8xf32> -> vector<2x8x8xf32>
    "tpu.trace_stop"() : () -> ()
    %49 = vector.broadcast %26 : vector<2x1x8xf32> to vector<2x8x8xf32>
    %50 = arith.addf %48, %49 : vector<2x8x8xf32>
    %cst_18 = arith.constant dense<0xFF800000> : vector<2x8xf32>
    %51 = vector.multi_reduction <maximumf>, %50, %cst_18 [2] : vector<2x8x8xf32> to vector<2x8xf32>
    %52 = vector.shape_cast %51 : vector<2x8xf32> to vector<2x8x1xf32>
    %53 = vector.broadcast %52 : vector<2x8x1xf32> to vector<2x8x8xf32>
    %54 = arith.subf %50, %53 : vector<2x8x8xf32>
    %55 = math.exp %54 : vector<2x8x8xf32>
    %cst_19 = arith.constant dense<0.000000e+00> : vector<2x8xf32>
    %56 = vector.multi_reduction <add>, %55, %cst_19 [2] : vector<2x8x8xf32> to vector<2x8xf32>
    %57 = vector.shape_cast %56 : vector<2x8xf32> to vector<2x8x1xf32>
    %58 = tpu.reciprocal %57 : vector<2x8x1xf32> -> vector<2x8x1xf32>
    %59 = vector.broadcast %58 : vector<2x8x1xf32> to vector<2x8x8xf32>
    %60 = arith.mulf %55, %59 : vector<2x8x8xf32>
    "tpu.trace_start"() <{level = 10 : i32, message = "bqk,bkd->bqd"}> : () -> ()
    %cst_20 = arith.constant dense<0.000000e+00> : vector<2x8x8xf32>
    %61 = tpu.matmul %60, %47, %cst_20 {dimension_numbers = #tpu.dot_dimension_numbers<[2], [1], [1], [2], [0, 0, 0, 1, 1, 2], [0], [0]>} : vector<2x8x8xf32>, vector<2x8x8xf32>, vector<2x8x8xf32> -> vector<2x8x8xf32>
    "tpu.trace_stop"() : () -> ()
    %62 = vector.shape_cast %61 : vector<2x8x8xf32> to vector<16x8xf32>
    %63 = vector.extract_strided_slice %41 {offsets = [0, 8], sizes = [16, 8], strides = [1, 1]} : vector<16x96xf32> to vector<16x8xf32>
    %64 = vector.shape_cast %63 : vector<16x8xf32> to vector<2x8x8xf32>
    %65 = vector.extract_strided_slice %41 {offsets = [0, 40], sizes = [16, 8], strides = [1, 1]} : vector<16x96xf32> to vector<16x8xf32>
    %66 = vector.shape_cast %65 : vector<16x8xf32> to vector<2x8x8xf32>
    %67 = vector.extract_strided_slice %41 {offsets = [0, 72], sizes = [16, 8], strides = [1, 1]} : vector<16x96xf32> to vector<16x8xf32>
    %68 = vector.shape_cast %67 : vector<16x8xf32> to vector<2x8x8xf32>
    "tpu.trace_start"() <{level = 10 : i32, message = "bqd,bkd->bqk"}> : () -> ()
    %cst_21 = arith.constant dense<0.000000e+00> : vector<2x8x8xf32>
    %69 = tpu.matmul %64, %66, %cst_21 {dimension_numbers = #tpu.dot_dimension_numbers<[2], [2], [1], [1], [0, 0, 0, 1, 1, 1], [0], [0]>} : vector<2x8x8xf32>, vector<2x8x8xf32>, vector<2x8x8xf32> -> vector<2x8x8xf32>
    "tpu.trace_stop"() : () -> ()
    %70 = vector.broadcast %26 : vector<2x1x8xf32> to vector<2x8x8xf32>
    %71 = arith.addf %69, %70 : vector<2x8x8xf32>
    %cst_22 = arith.constant dense<0xFF800000> : vector<2x8xf32>
    %72 = vector.multi_reduction <maximumf>, %71, %cst_22 [2] : vector<2x8x8xf32> to vector<2x8xf32>
    %73 = vector.shape_cast %72 : vector<2x8xf32> to vector<2x8x1xf32>
    %74 = vector.broadcast %73 : vector<2x8x1xf32> to vector<2x8x8xf32>
    %75 = arith.subf %71, %74 : vector<2x8x8xf32>
    %76 = math.exp %75 : vector<2x8x8xf32>
    %cst_23 = arith.constant dense<0.000000e+00> : vector<2x8xf32>
    %77 = vector.multi_reduction <add>, %76, %cst_23 [2] : vector<2x8x8xf32> to vector<2x8xf32>
    %78 = vector.shape_cast %77 : vector<2x8xf32> to vector<2x8x1xf32>
    %79 = tpu.reciprocal %78 : vector<2x8x1xf32> -> vector<2x8x1xf32>
    %80 = vector.broadcast %79 : vector<2x8x1xf32> to vector<2x8x8xf32>
    %81 = arith.mulf %76, %80 : vector<2x8x8xf32>
    "tpu.trace_start"() <{level = 10 : i32, message = "bqk,bkd->bqd"}> : () -> ()
    %cst_24 = arith.constant dense<0.000000e+00> : vector<2x8x8xf32>
    %82 = tpu.matmul %81, %68, %cst_24 {dimension_numbers = #tpu.dot_dimension_numbers<[2], [1], [1], [2], [0, 0, 0, 1, 1, 2], [0], [0]>} : vector<2x8x8xf32>, vector<2x8x8xf32>, vector<2x8x8xf32> -> vector<2x8x8xf32>
    "tpu.trace_stop"() : () -> ()
    %83 = vector.shape_cast %82 : vector<2x8x8xf32> to vector<16x8xf32>
    %84 = vector.extract_strided_slice %41 {offsets = [0, 16], sizes = [16, 8], strides = [1, 1]} : vector<16x96xf32> to vector<16x8xf32>
    %85 = vector.shape_cast %84 : vector<16x8xf32> to vector<2x8x8xf32>
    %86 = vector.extract_strided_slice %41 {offsets = [0, 48], sizes = [16, 8], strides = [1, 1]} : vector<16x96xf32> to vector<16x8xf32>
    %87 = vector.shape_cast %86 : vector<16x8xf32> to vector<2x8x8xf32>
    %88 = vector.extract_strided_slice %41 {offsets = [0, 80], sizes = [16, 8], strides = [1, 1]} : vector<16x96xf32> to vector<16x8xf32>
    %89 = vector.shape_cast %88 : vector<16x8xf32> to vector<2x8x8xf32>
    "tpu.trace_start"() <{level = 10 : i32, message = "bqd,bkd->bqk"}> : () -> ()
    %cst_25 = arith.constant dense<0.000000e+00> : vector<2x8x8xf32>
    %90 = tpu.matmul %85, %87, %cst_25 {dimension_numbers = #tpu.dot_dimension_numbers<[2], [2], [1], [1], [0, 0, 0, 1, 1, 1], [0], [0]>} : vector<2x8x8xf32>, vector<2x8x8xf32>, vector<2x8x8xf32> -> vector<2x8x8xf32>
    "tpu.trace_stop"() : () -> ()
    %91 = vector.broadcast %26 : vector<2x1x8xf32> to vector<2x8x8xf32>
    %92 = arith.addf %90, %91 : vector<2x8x8xf32>
    %cst_26 = arith.constant dense<0xFF800000> : vector<2x8xf32>
    %93 = vector.multi_reduction <maximumf>, %92, %cst_26 [2] : vector<2x8x8xf32> to vector<2x8xf32>
    %94 = vector.shape_cast %93 : vector<2x8xf32> to vector<2x8x1xf32>
    %95 = vector.broadcast %94 : vector<2x8x1xf32> to vector<2x8x8xf32>
    %96 = arith.subf %92, %95 : vector<2x8x8xf32>
    %97 = math.exp %96 : vector<2x8x8xf32>
    %cst_27 = arith.constant dense<0.000000e+00> : vector<2x8xf32>
    %98 = vector.multi_reduction <add>, %97, %cst_27 [2] : vector<2x8x8xf32> to vector<2x8xf32>
    %99 = vector.shape_cast %98 : vector<2x8xf32> to vector<2x8x1xf32>
    %100 = tpu.reciprocal %99 : vector<2x8x1xf32> -> vector<2x8x1xf32>
    %101 = vector.broadcast %100 : vector<2x8x1xf32> to vector<2x8x8xf32>
    %102 = arith.mulf %97, %101 : vector<2x8x8xf32>
    "tpu.trace_start"() <{level = 10 : i32, message = "bqk,bkd->bqd"}> : () -> ()
    %cst_28 = arith.constant dense<0.000000e+00> : vector<2x8x8xf32>
    %103 = tpu.matmul %102, %89, %cst_28 {dimension_numbers = #tpu.dot_dimension_numbers<[2], [1], [1], [2], [0, 0, 0, 1, 1, 2], [0], [0]>} : vector<2x8x8xf32>, vector<2x8x8xf32>, vector<2x8x8xf32> -> vector<2x8x8xf32>
    "tpu.trace_stop"() : () -> ()
    %104 = vector.shape_cast %103 : vector<2x8x8xf32> to vector<16x8xf32>
    %105 = vector.extract_strided_slice %41 {offsets = [0, 24], sizes = [16, 8], strides = [1, 1]} : vector<16x96xf32> to vector<16x8xf32>
    %106 = vector.shape_cast %105 : vector<16x8xf32> to vector<2x8x8xf32>
    %107 = vector.extract_strided_slice %41 {offsets = [0, 56], sizes = [16, 8], strides = [1, 1]} : vector<16x96xf32> to vector<16x8xf32>
    %108 = vector.shape_cast %107 : vector<16x8xf32> to vector<2x8x8xf32>
    %109 = vector.extract_strided_slice %41 {offsets = [0, 88], sizes = [16, 8], strides = [1, 1]} : vector<16x96xf32> to vector<16x8xf32>
    %110 = vector.shape_cast %109 : vector<16x8xf32> to vector<2x8x8xf32>
    "tpu.trace_start"() <{level = 10 : i32, message = "bqd,bkd->bqk"}> : () -> ()
    %cst_29 = arith.constant dense<0.000000e+00> : vector<2x8x8xf32>
    %111 = tpu.matmul %106, %108, %cst_29 {dimension_numbers = #tpu.dot_dimension_numbers<[2], [2], [1], [1], [0, 0, 0, 1, 1, 1], [0], [0]>} : vector<2x8x8xf32>, vector<2x8x8xf32>, vector<2x8x8xf32> -> vector<2x8x8xf32>
    "tpu.trace_stop"() : () -> ()
    %112 = vector.broadcast %26 : vector<2x1x8xf32> to vector<2x8x8xf32>
    %113 = arith.addf %111, %112 : vector<2x8x8xf32>
    %cst_30 = arith.constant dense<0xFF800000> : vector<2x8xf32>
    %114 = vector.multi_reduction <maximumf>, %113, %cst_30 [2] : vector<2x8x8xf32> to vector<2x8xf32>
    %115 = vector.shape_cast %114 : vector<2x8xf32> to vector<2x8x1xf32>
    %116 = vector.broadcast %115 : vector<2x8x1xf32> to vector<2x8x8xf32>
    %117 = arith.subf %113, %116 : vector<2x8x8xf32>
    %118 = math.exp %117 : vector<2x8x8xf32>
    %cst_31 = arith.constant dense<0.000000e+00> : vector<2x8xf32>
    %119 = vector.multi_reduction <add>, %118, %cst_31 [2] : vector<2x8x8xf32> to vector<2x8xf32>
    %120 = vector.shape_cast %119 : vector<2x8xf32> to vector<2x8x1xf32>
    %121 = tpu.reciprocal %120 : vector<2x8x1xf32> -> vector<2x8x1xf32>
    %122 = vector.broadcast %121 : vector<2x8x1xf32> to vector<2x8x8xf32>
    %123 = arith.mulf %118, %122 : vector<2x8x8xf32>
    "tpu.trace_start"() <{level = 10 : i32, message = "bqk,bkd->bqd"}> : () -> ()
    %cst_32 = arith.constant dense<0.000000e+00> : vector<2x8x8xf32>
    %124 = tpu.matmul %123, %110, %cst_32 {dimension_numbers = #tpu.dot_dimension_numbers<[2], [1], [1], [2], [0, 0, 0, 1, 1, 2], [0], [0]>} : vector<2x8x8xf32>, vector<2x8x8xf32>, vector<2x8x8xf32> -> vector<2x8x8xf32>
    "tpu.trace_stop"() : () -> ()
    %125 = vector.shape_cast %124 : vector<2x8x8xf32> to vector<16x8xf32>
    %126 = tpu.concatenate %62, %83, %104, %125 in 1 : vector<16x8xf32>, vector<16x8xf32>, vector<16x8xf32>, vector<16x8xf32> -> vector<16x32xf32>
    %c0_33 = arith.constant 0 : index
    %c0_34 = arith.constant 0 : index
    %c0_35 = arith.constant 0 : index
    %127 = vector.load %arg4[%c0_33, %c0_34, %c0_35] : memref<2x32x32xf32, #tpu.memory_space<vmem>>, vector<1x32x32xf32>
    %128 = vector.shape_cast %127 : vector<1x32x32xf32> to vector<32x32xf32>
    %cst_36 = arith.constant dense<0.000000e+00> : vector<16x32xf32>
    %129 = tpu.matmul %126, %128, %cst_36 {dimension_numbers = #tpu.dot_dimension_numbers<[1], [0], [0], [1], [0, 0, 1, 1], [], []>} : vector<16x32xf32>, vector<32x32xf32>, vector<16x32xf32> -> vector<16x32xf32>
    %130 = vector.broadcast %30 : vector<1x32xf32> to vector<16x32xf32>
    %131 = arith.addf %129, %130 : vector<16x32xf32>
    %132 = arith.addf %131, %25 : vector<16x32xf32>
    %cst_37 = arith.constant dense<0.000000e+00> : vector<16xf32>
    %133 = vector.multi_reduction <add>, %132, %cst_37 [1] : vector<16x32xf32> to vector<16xf32>
    %134 = vector.shape_cast %133 : vector<16xf32> to vector<16x1xf32>
    %cst_38 = arith.constant 3.200000e+01 : f32
    %135 = vector.broadcast %cst_38 : f32 to vector<16x1xf32>
    %136 = arith.divf %134, %135 : vector<16x1xf32>
    %137 = vector.broadcast %136 : vector<16x1xf32> to vector<16x32xf32>
    %138 = arith.subf %132, %137 : vector<16x32xf32>
    %139 = arith.mulf %138, %138 : vector<16x32xf32>
    %cst_39 = arith.constant dense<0.000000e+00> : vector<16xf32>
    %140 = vector.multi_reduction <add>, %139, %cst_39 [1] : vector<16x32xf32> to vector<16xf32>
    %141 = vector.shape_cast %140 : vector<16xf32> to vector<16x1xf32>
    %cst_40 = arith.constant 3.200000e+01 : f32
    %142 = vector.broadcast %cst_40 : f32 to vector<16x1xf32>
    %143 = arith.divf %141, %142 : vector<16x1xf32>
    %144 = vector.broadcast %136 : vector<16x1xf32> to vector<16x32xf32>
    %145 = arith.subf %132, %144 : vector<16x32xf32>
    %cst_41 = arith.constant 9.99999996E-13 : f32
    %146 = vector.broadcast %cst_41 : f32 to vector<16x1xf32>
    %147 = arith.addf %143, %146 : vector<16x1xf32>
    %148 = math.rsqrt %147 : vector<16x1xf32>
    %149 = vector.broadcast %148 : vector<16x1xf32> to vector<16x32xf32>
    %150 = arith.mulf %145, %149 : vector<16x32xf32>
    %151 = vector.broadcast %31 : vector<1x32xf32> to vector<16x32xf32>
    %152 = arith.mulf %150, %151 : vector<16x32xf32>
    %153 = vector.broadcast %32 : vector<1x32xf32> to vector<16x32xf32>
    %154 = arith.addf %152, %153 : vector<16x32xf32>
    %c0_42 = arith.constant 0 : index
    %c0_43 = arith.constant 0 : index
    %c0_44 = arith.constant 0 : index
    %155 = vector.load %arg5[%c0_42, %c0_43, %c0_44] : memref<2x32x64xf32, #tpu.memory_space<vmem>>, vector<1x32x64xf32>
    %156 = vector.shape_cast %155 : vector<1x32x64xf32> to vector<32x64xf32>
    %cst_45 = arith.constant dense<0.000000e+00> : vector<16x64xf32>
    %157 = tpu.matmul %154, %156, %cst_45 {dimension_numbers = #tpu.dot_dimension_numbers<[1], [0], [0], [1], [0, 0, 1, 1], [], []>} : vector<16x32xf32>, vector<32x64xf32>, vector<16x64xf32> -> vector<16x64xf32>
    %158 = vector.broadcast %33 : vector<1x64xf32> to vector<16x64xf32>
    %159 = arith.addf %157, %158 : vector<16x64xf32>
    %cst_46 = arith.constant 5.000000e-01 : f32
    %160 = vector.broadcast %cst_46 : f32 to vector<16x64xf32>
    %161 = arith.mulf %160, %159 : vector<16x64xf32>
    %cst_47 = arith.constant 0.707106769 : f32
    %162 = vector.broadcast %cst_47 : f32 to vector<16x64xf32>
    %163 = arith.mulf %159, %162 : vector<16x64xf32>
    %164 = math.erf %163 : vector<16x64xf32>
    %cst_48 = arith.constant 1.000000e+00 : f32
    %165 = vector.broadcast %cst_48 : f32 to vector<16x64xf32>
    %166 = arith.addf %165, %164 : vector<16x64xf32>
    %167 = arith.mulf %161, %166 : vector<16x64xf32>
    %c0_49 = arith.constant 0 : index
    %c0_50 = arith.constant 0 : index
    %c0_51 = arith.constant 0 : index
    %168 = vector.load %arg6[%c0_49, %c0_50, %c0_51] : memref<2x64x32xf32, #tpu.memory_space<vmem>>, vector<1x64x32xf32>
    %169 = vector.shape_cast %168 : vector<1x64x32xf32> to vector<64x32xf32>
    %cst_52 = arith.constant dense<0.000000e+00> : vector<16x32xf32>
    %170 = tpu.matmul %167, %169, %cst_52 {dimension_numbers = #tpu.dot_dimension_numbers<[1], [0], [0], [1], [0, 0, 1, 1], [], []>} : vector<16x64xf32>, vector<64x32xf32>, vector<16x32xf32> -> vector<16x32xf32>
    %171 = vector.broadcast %34 : vector<1x32xf32> to vector<16x32xf32>
    %172 = arith.addf %170, %171 : vector<16x32xf32>
    %173 = arith.addf %172, %154 : vector<16x32xf32>
    %cst_53 = arith.constant dense<0.000000e+00> : vector<16xf32>
    %174 = vector.multi_reduction <add>, %173, %cst_53 [1] : vector<16x32xf32> to vector<16xf32>
    %175 = vector.shape_cast %174 : vector<16xf32> to vector<16x1xf32>
    %cst_54 = arith.constant 3.200000e+01 : f32
    %176 = vector.broadcast %cst_54 : f32 to vector<16x1xf32>
    %177 = arith.divf %175, %176 : vector<16x1xf32>
    %178 = vector.broadcast %177 : vector<16x1xf32> to vector<16x32xf32>
    %179 = arith.subf %173, %178 : vector<16x32xf32>
    %180 = arith.mulf %179, %179 : vector<16x32xf32>
    %cst_55 = arith.constant dense<0.000000e+00> : vector<16xf32>
    %181 = vector.multi_reduction <add>, %180, %cst_55 [1] : vector<16x32xf32> to vector<16xf32>
    %182 = vector.shape_cast %181 : vector<16xf32> to vector<16x1xf32>
    %cst_56 = arith.constant 3.200000e+01 : f32
    %183 = vector.broadcast %cst_56 : f32 to vector<16x1xf32>
    %184 = arith.divf %182, %183 : vector<16x1xf32>
    %185 = vector.broadcast %177 : vector<16x1xf32> to vector<16x32xf32>
    %186 = arith.subf %173, %185 : vector<16x32xf32>
    %cst_57 = arith.constant 9.99999996E-13 : f32
    %187 = vector.broadcast %cst_57 : f32 to vector<16x1xf32>
    %188 = arith.addf %184, %187 : vector<16x1xf32>
    %189 = math.rsqrt %188 : vector<16x1xf32>
    %190 = vector.broadcast %189 : vector<16x1xf32> to vector<16x32xf32>
    %191 = arith.mulf %186, %190 : vector<16x32xf32>
    %192 = vector.broadcast %35 : vector<1x32xf32> to vector<16x32xf32>
    %193 = arith.mulf %191, %192 : vector<16x32xf32>
    %194 = vector.broadcast %36 : vector<1x32xf32> to vector<16x32xf32>
    %195 = arith.addf %193, %194 : vector<16x32xf32>
    %c1 = arith.constant 1 : index
    %c0_58 = arith.constant 0 : index
    %c0_59 = arith.constant 0 : index
    %196 = vector.load %arg7[%c1, %c0_58, %c0_59] : memref<2x8x128xf32, #tpu.memory_space<vmem>>, vector<1x8x128xf32>
    %197 = vector.shape_cast %196 : vector<1x8x128xf32> to vector<8x128xf32>
    %198 = vector.extract_strided_slice %197 {offsets = [0, 0], sizes = [1, 96], strides = [1, 1]} : vector<8x128xf32> to vector<1x96xf32>
    %199 = vector.extract_strided_slice %197 {offsets = [1, 0], sizes = [1, 32], strides = [1, 1]} : vector<8x128xf32> to vector<1x32xf32>
    %200 = vector.extract_strided_slice %197 {offsets = [2, 0], sizes = [1, 32], strides = [1, 1]} : vector<8x128xf32> to vector<1x32xf32>
    %201 = vector.extract_strided_slice %197 {offsets = [3, 0], sizes = [1, 32], strides = [1, 1]} : vector<8x128xf32> to vector<1x32xf32>
    %202 = vector.extract_strided_slice %197 {offsets = [4, 0], sizes = [1, 64], strides = [1, 1]} : vector<8x128xf32> to vector<1x64xf32>
    %203 = vector.extract_strided_slice %197 {offsets = [5, 0], sizes = [1, 32], strides = [1, 1]} : vector<8x128xf32> to vector<1x32xf32>
    %204 = vector.extract_strided_slice %197 {offsets = [6, 0], sizes = [1, 32], strides = [1, 1]} : vector<8x128xf32> to vector<1x32xf32>
    %205 = vector.extract_strided_slice %197 {offsets = [7, 0], sizes = [1, 32], strides = [1, 1]} : vector<8x128xf32> to vector<1x32xf32>
    %c1_60 = arith.constant 1 : index
    %c0_61 = arith.constant 0 : index
    %c0_62 = arith.constant 0 : index
    %206 = vector.load %arg3[%c1_60, %c0_61, %c0_62] : memref<2x32x96xf32, #tpu.memory_space<vmem>>, vector<1x32x96xf32>
    %207 = vector.shape_cast %206 : vector<1x32x96xf32> to vector<32x96xf32>
    %cst_63 = arith.constant dense<0.000000e+00> : vector<16x96xf32>
    %208 = tpu.matmul %195, %207, %cst_63 {dimension_numbers = #tpu.dot_dimension_numbers<[1], [0], [0], [1], [0, 0, 1, 1], [], []>} : vector<16x32xf32>, vector<32x96xf32>, vector<16x96xf32> -> vector<16x96xf32>
    %209 = vector.broadcast %198 : vector<1x96xf32> to vector<16x96xf32>
    %210 = arith.addf %208, %209 : vector<16x96xf32>
    %211 = vector.extract_strided_slice %210 {offsets = [0, 0], sizes = [16, 8], strides = [1, 1]} : vector<16x96xf32> to vector<16x8xf32>
    %212 = vector.shape_cast %211 : vector<16x8xf32> to vector<2x8x8xf32>
    %213 = vector.extract_strided_slice %210 {offsets = [0, 32], sizes = [16, 8], strides = [1, 1]} : vector<16x96xf32> to vector<16x8xf32>
    %214 = vector.shape_cast %213 : vector<16x8xf32> to vector<2x8x8xf32>
    %215 = vector.extract_strided_slice %210 {offsets = [0, 64], sizes = [16, 8], strides = [1, 1]} : vector<16x96xf32> to vector<16x8xf32>
    %216 = vector.shape_cast %215 : vector<16x8xf32> to vector<2x8x8xf32>
    "tpu.trace_start"() <{level = 10 : i32, message = "bqd,bkd->bqk"}> : () -> ()
    %cst_64 = arith.constant dense<0.000000e+00> : vector<2x8x8xf32>
    %217 = tpu.matmul %212, %214, %cst_64 {dimension_numbers = #tpu.dot_dimension_numbers<[2], [2], [1], [1], [0, 0, 0, 1, 1, 1], [0], [0]>} : vector<2x8x8xf32>, vector<2x8x8xf32>, vector<2x8x8xf32> -> vector<2x8x8xf32>
    "tpu.trace_stop"() : () -> ()
    %218 = vector.broadcast %26 : vector<2x1x8xf32> to vector<2x8x8xf32>
    %219 = arith.addf %217, %218 : vector<2x8x8xf32>
    %cst_65 = arith.constant dense<0xFF800000> : vector<2x8xf32>
    %220 = vector.multi_reduction <maximumf>, %219, %cst_65 [2] : vector<2x8x8xf32> to vector<2x8xf32>
    %221 = vector.shape_cast %220 : vector<2x8xf32> to vector<2x8x1xf32>
    %222 = vector.broadcast %221 : vector<2x8x1xf32> to vector<2x8x8xf32>
    %223 = arith.subf %219, %222 : vector<2x8x8xf32>
    %224 = math.exp %223 : vector<2x8x8xf32>
    %cst_66 = arith.constant dense<0.000000e+00> : vector<2x8xf32>
    %225 = vector.multi_reduction <add>, %224, %cst_66 [2] : vector<2x8x8xf32> to vector<2x8xf32>
    %226 = vector.shape_cast %225 : vector<2x8xf32> to vector<2x8x1xf32>
    %227 = tpu.reciprocal %226 : vector<2x8x1xf32> -> vector<2x8x1xf32>
    %228 = vector.broadcast %227 : vector<2x8x1xf32> to vector<2x8x8xf32>
    %229 = arith.mulf %224, %228 : vector<2x8x8xf32>
    "tpu.trace_start"() <{level = 10 : i32, message = "bqk,bkd->bqd"}> : () -> ()
    %cst_67 = arith.constant dense<0.000000e+00> : vector<2x8x8xf32>
    %230 = tpu.matmul %229, %216, %cst_67 {dimension_numbers = #tpu.dot_dimension_numbers<[2], [1], [1], [2], [0, 0, 0, 1, 1, 2], [0], [0]>} : vector<2x8x8xf32>, vector<2x8x8xf32>, vector<2x8x8xf32> -> vector<2x8x8xf32>
    "tpu.trace_stop"() : () -> ()
    %231 = vector.shape_cast %230 : vector<2x8x8xf32> to vector<16x8xf32>
    %232 = vector.extract_strided_slice %210 {offsets = [0, 8], sizes = [16, 8], strides = [1, 1]} : vector<16x96xf32> to vector<16x8xf32>
    %233 = vector.shape_cast %232 : vector<16x8xf32> to vector<2x8x8xf32>
    %234 = vector.extract_strided_slice %210 {offsets = [0, 40], sizes = [16, 8], strides = [1, 1]} : vector<16x96xf32> to vector<16x8xf32>
    %235 = vector.shape_cast %234 : vector<16x8xf32> to vector<2x8x8xf32>
    %236 = vector.extract_strided_slice %210 {offsets = [0, 72], sizes = [16, 8], strides = [1, 1]} : vector<16x96xf32> to vector<16x8xf32>
    %237 = vector.shape_cast %236 : vector<16x8xf32> to vector<2x8x8xf32>
    "tpu.trace_start"() <{level = 10 : i32, message = "bqd,bkd->bqk"}> : () -> ()
    %cst_68 = arith.constant dense<0.000000e+00> : vector<2x8x8xf32>
    %238 = tpu.matmul %233, %235, %cst_68 {dimension_numbers = #tpu.dot_dimension_numbers<[2], [2], [1], [1], [0, 0, 0, 1, 1, 1], [0], [0]>} : vector<2x8x8xf32>, vector<2x8x8xf32>, vector<2x8x8xf32> -> vector<2x8x8xf32>
    "tpu.trace_stop"() : () -> ()
    %239 = vector.broadcast %26 : vector<2x1x8xf32> to vector<2x8x8xf32>
    %240 = arith.addf %238, %239 : vector<2x8x8xf32>
    %cst_69 = arith.constant dense<0xFF800000> : vector<2x8xf32>
    %241 = vector.multi_reduction <maximumf>, %240, %cst_69 [2] : vector<2x8x8xf32> to vector<2x8xf32>
    %242 = vector.shape_cast %241 : vector<2x8xf32> to vector<2x8x1xf32>
    %243 = vector.broadcast %242 : vector<2x8x1xf32> to vector<2x8x8xf32>
    %244 = arith.subf %240, %243 : vector<2x8x8xf32>
    %245 = math.exp %244 : vector<2x8x8xf32>
    %cst_70 = arith.constant dense<0.000000e+00> : vector<2x8xf32>
    %246 = vector.multi_reduction <add>, %245, %cst_70 [2] : vector<2x8x8xf32> to vector<2x8xf32>
    %247 = vector.shape_cast %246 : vector<2x8xf32> to vector<2x8x1xf32>
    %248 = tpu.reciprocal %247 : vector<2x8x1xf32> -> vector<2x8x1xf32>
    %249 = vector.broadcast %248 : vector<2x8x1xf32> to vector<2x8x8xf32>
    %250 = arith.mulf %245, %249 : vector<2x8x8xf32>
    "tpu.trace_start"() <{level = 10 : i32, message = "bqk,bkd->bqd"}> : () -> ()
    %cst_71 = arith.constant dense<0.000000e+00> : vector<2x8x8xf32>
    %251 = tpu.matmul %250, %237, %cst_71 {dimension_numbers = #tpu.dot_dimension_numbers<[2], [1], [1], [2], [0, 0, 0, 1, 1, 2], [0], [0]>} : vector<2x8x8xf32>, vector<2x8x8xf32>, vector<2x8x8xf32> -> vector<2x8x8xf32>
    "tpu.trace_stop"() : () -> ()
    %252 = vector.shape_cast %251 : vector<2x8x8xf32> to vector<16x8xf32>
    %253 = vector.extract_strided_slice %210 {offsets = [0, 16], sizes = [16, 8], strides = [1, 1]} : vector<16x96xf32> to vector<16x8xf32>
    %254 = vector.shape_cast %253 : vector<16x8xf32> to vector<2x8x8xf32>
    %255 = vector.extract_strided_slice %210 {offsets = [0, 48], sizes = [16, 8], strides = [1, 1]} : vector<16x96xf32> to vector<16x8xf32>
    %256 = vector.shape_cast %255 : vector<16x8xf32> to vector<2x8x8xf32>
    %257 = vector.extract_strided_slice %210 {offsets = [0, 80], sizes = [16, 8], strides = [1, 1]} : vector<16x96xf32> to vector<16x8xf32>
    %258 = vector.shape_cast %257 : vector<16x8xf32> to vector<2x8x8xf32>
    "tpu.trace_start"() <{level = 10 : i32, message = "bqd,bkd->bqk"}> : () -> ()
    %cst_72 = arith.constant dense<0.000000e+00> : vector<2x8x8xf32>
    %259 = tpu.matmul %254, %256, %cst_72 {dimension_numbers = #tpu.dot_dimension_numbers<[2], [2], [1], [1], [0, 0, 0, 1, 1, 1], [0], [0]>} : vector<2x8x8xf32>, vector<2x8x8xf32>, vector<2x8x8xf32> -> vector<2x8x8xf32>
    "tpu.trace_stop"() : () -> ()
    %260 = vector.broadcast %26 : vector<2x1x8xf32> to vector<2x8x8xf32>
    %261 = arith.addf %259, %260 : vector<2x8x8xf32>
    %cst_73 = arith.constant dense<0xFF800000> : vector<2x8xf32>
    %262 = vector.multi_reduction <maximumf>, %261, %cst_73 [2] : vector<2x8x8xf32> to vector<2x8xf32>
    %263 = vector.shape_cast %262 : vector<2x8xf32> to vector<2x8x1xf32>
    %264 = vector.broadcast %263 : vector<2x8x1xf32> to vector<2x8x8xf32>
    %265 = arith.subf %261, %264 : vector<2x8x8xf32>
    %266 = math.exp %265 : vector<2x8x8xf32>
    %cst_74 = arith.constant dense<0.000000e+00> : vector<2x8xf32>
    %267 = vector.multi_reduction <add>, %266, %cst_74 [2] : vector<2x8x8xf32> to vector<2x8xf32>
    %268 = vector.shape_cast %267 : vector<2x8xf32> to vector<2x8x1xf32>
    %269 = tpu.reciprocal %268 : vector<2x8x1xf32> -> vector<2x8x1xf32>
    %270 = vector.broadcast %269 : vector<2x8x1xf32> to vector<2x8x8xf32>
    %271 = arith.mulf %266, %270 : vector<2x8x8xf32>
    "tpu.trace_start"() <{level = 10 : i32, message = "bqk,bkd->bqd"}> : () -> ()
    %cst_75 = arith.constant dense<0.000000e+00> : vector<2x8x8xf32>
    %272 = tpu.matmul %271, %258, %cst_75 {dimension_numbers = #tpu.dot_dimension_numbers<[2], [1], [1], [2], [0, 0, 0, 1, 1, 2], [0], [0]>} : vector<2x8x8xf32>, vector<2x8x8xf32>, vector<2x8x8xf32> -> vector<2x8x8xf32>
    "tpu.trace_stop"() : () -> ()
    %273 = vector.shape_cast %272 : vector<2x8x8xf32> to vector<16x8xf32>
    %274 = vector.extract_strided_slice %210 {offsets = [0, 24], sizes = [16, 8], strides = [1, 1]} : vector<16x96xf32> to vector<16x8xf32>
    %275 = vector.shape_cast %274 : vector<16x8xf32> to vector<2x8x8xf32>
    %276 = vector.extract_strided_slice %210 {offsets = [0, 56], sizes = [16, 8], strides = [1, 1]} : vector<16x96xf32> to vector<16x8xf32>
    %277 = vector.shape_cast %276 : vector<16x8xf32> to vector<2x8x8xf32>
    %278 = vector.extract_strided_slice %210 {offsets = [0, 88], sizes = [16, 8], strides = [1, 1]} : vector<16x96xf32> to vector<16x8xf32>
    %279 = vector.shape_cast %278 : vector<16x8xf32> to vector<2x8x8xf32>
    "tpu.trace_start"() <{level = 10 : i32, message = "bqd,bkd->bqk"}> : () -> ()
    %cst_76 = arith.constant dense<0.000000e+00> : vector<2x8x8xf32>
    %280 = tpu.matmul %275, %277, %cst_76 {dimension_numbers = #tpu.dot_dimension_numbers<[2], [2], [1], [1], [0, 0, 0, 1, 1, 1], [0], [0]>} : vector<2x8x8xf32>, vector<2x8x8xf32>, vector<2x8x8xf32> -> vector<2x8x8xf32>
    "tpu.trace_stop"() : () -> ()
    %281 = vector.broadcast %26 : vector<2x1x8xf32> to vector<2x8x8xf32>
    %282 = arith.addf %280, %281 : vector<2x8x8xf32>
    %cst_77 = arith.constant dense<0xFF800000> : vector<2x8xf32>
    %283 = vector.multi_reduction <maximumf>, %282, %cst_77 [2] : vector<2x8x8xf32> to vector<2x8xf32>
    %284 = vector.shape_cast %283 : vector<2x8xf32> to vector<2x8x1xf32>
    %285 = vector.broadcast %284 : vector<2x8x1xf32> to vector<2x8x8xf32>
    %286 = arith.subf %282, %285 : vector<2x8x8xf32>
    %287 = math.exp %286 : vector<2x8x8xf32>
    %cst_78 = arith.constant dense<0.000000e+00> : vector<2x8xf32>
    %288 = vector.multi_reduction <add>, %287, %cst_78 [2] : vector<2x8x8xf32> to vector<2x8xf32>
    %289 = vector.shape_cast %288 : vector<2x8xf32> to vector<2x8x1xf32>
    %290 = tpu.reciprocal %289 : vector<2x8x1xf32> -> vector<2x8x1xf32>
    %291 = vector.broadcast %290 : vector<2x8x1xf32> to vector<2x8x8xf32>
    %292 = arith.mulf %287, %291 : vector<2x8x8xf32>
    "tpu.trace_start"() <{level = 10 : i32, message = "bqk,bkd->bqd"}> : () -> ()
    %cst_79 = arith.constant dense<0.000000e+00> : vector<2x8x8xf32>
    %293 = tpu.matmul %292, %279, %cst_79 {dimension_numbers = #tpu.dot_dimension_numbers<[2], [1], [1], [2], [0, 0, 0, 1, 1, 2], [0], [0]>} : vector<2x8x8xf32>, vector<2x8x8xf32>, vector<2x8x8xf32> -> vector<2x8x8xf32>
    "tpu.trace_stop"() : () -> ()
    %294 = vector.shape_cast %293 : vector<2x8x8xf32> to vector<16x8xf32>
    %295 = tpu.concatenate %231, %252, %273, %294 in 1 : vector<16x8xf32>, vector<16x8xf32>, vector<16x8xf32>, vector<16x8xf32> -> vector<16x32xf32>
    %c1_80 = arith.constant 1 : index
    %c0_81 = arith.constant 0 : index
    %c0_82 = arith.constant 0 : index
    %296 = vector.load %arg4[%c1_80, %c0_81, %c0_82] : memref<2x32x32xf32, #tpu.memory_space<vmem>>, vector<1x32x32xf32>
    %297 = vector.shape_cast %296 : vector<1x32x32xf32> to vector<32x32xf32>
    %cst_83 = arith.constant dense<0.000000e+00> : vector<16x32xf32>
    %298 = tpu.matmul %295, %297, %cst_83 {dimension_numbers = #tpu.dot_dimension_numbers<[1], [0], [0], [1], [0, 0, 1, 1], [], []>} : vector<16x32xf32>, vector<32x32xf32>, vector<16x32xf32> -> vector<16x32xf32>
    %299 = vector.broadcast %199 : vector<1x32xf32> to vector<16x32xf32>
    %300 = arith.addf %298, %299 : vector<16x32xf32>
    %301 = arith.addf %300, %195 : vector<16x32xf32>
    %cst_84 = arith.constant dense<0.000000e+00> : vector<16xf32>
    %302 = vector.multi_reduction <add>, %301, %cst_84 [1] : vector<16x32xf32> to vector<16xf32>
    %303 = vector.shape_cast %302 : vector<16xf32> to vector<16x1xf32>
    %cst_85 = arith.constant 3.200000e+01 : f32
    %304 = vector.broadcast %cst_85 : f32 to vector<16x1xf32>
    %305 = arith.divf %303, %304 : vector<16x1xf32>
    %306 = vector.broadcast %305 : vector<16x1xf32> to vector<16x32xf32>
    %307 = arith.subf %301, %306 : vector<16x32xf32>
    %308 = arith.mulf %307, %307 : vector<16x32xf32>
    %cst_86 = arith.constant dense<0.000000e+00> : vector<16xf32>
    %309 = vector.multi_reduction <add>, %308, %cst_86 [1] : vector<16x32xf32> to vector<16xf32>
    %310 = vector.shape_cast %309 : vector<16xf32> to vector<16x1xf32>
    %cst_87 = arith.constant 3.200000e+01 : f32
    %311 = vector.broadcast %cst_87 : f32 to vector<16x1xf32>
    %312 = arith.divf %310, %311 : vector<16x1xf32>
    %313 = vector.broadcast %305 : vector<16x1xf32> to vector<16x32xf32>
    %314 = arith.subf %301, %313 : vector<16x32xf32>
    %cst_88 = arith.constant 9.99999996E-13 : f32
    %315 = vector.broadcast %cst_88 : f32 to vector<16x1xf32>
    %316 = arith.addf %312, %315 : vector<16x1xf32>
    %317 = math.rsqrt %316 : vector<16x1xf32>
    %318 = vector.broadcast %317 : vector<16x1xf32> to vector<16x32xf32>
    %319 = arith.mulf %314, %318 : vector<16x32xf32>
    %320 = vector.broadcast %200 : vector<1x32xf32> to vector<16x32xf32>
    %321 = arith.mulf %319, %320 : vector<16x32xf32>
    %322 = vector.broadcast %201 : vector<1x32xf32> to vector<16x32xf32>
    %323 = arith.addf %321, %322 : vector<16x32xf32>
    %c1_89 = arith.constant 1 : index
    %c0_90 = arith.constant 0 : index
    %c0_91 = arith.constant 0 : index
    %324 = vector.load %arg5[%c1_89, %c0_90, %c0_91] : memref<2x32x64xf32, #tpu.memory_space<vmem>>, vector<1x32x64xf32>
    %325 = vector.shape_cast %324 : vector<1x32x64xf32> to vector<32x64xf32>
    %cst_92 = arith.constant dense<0.000000e+00> : vector<16x64xf32>
    %326 = tpu.matmul %323, %325, %cst_92 {dimension_numbers = #tpu.dot_dimension_numbers<[1], [0], [0], [1], [0, 0, 1, 1], [], []>} : vector<16x32xf32>, vector<32x64xf32>, vector<16x64xf32> -> vector<16x64xf32>
    %327 = vector.broadcast %202 : vector<1x64xf32> to vector<16x64xf32>
    %328 = arith.addf %326, %327 : vector<16x64xf32>
    %cst_93 = arith.constant 5.000000e-01 : f32
    %329 = vector.broadcast %cst_93 : f32 to vector<16x64xf32>
    %330 = arith.mulf %329, %328 : vector<16x64xf32>
    %cst_94 = arith.constant 0.707106769 : f32
    %331 = vector.broadcast %cst_94 : f32 to vector<16x64xf32>
    %332 = arith.mulf %328, %331 : vector<16x64xf32>
    %333 = math.erf %332 : vector<16x64xf32>
    %cst_95 = arith.constant 1.000000e+00 : f32
    %334 = vector.broadcast %cst_95 : f32 to vector<16x64xf32>
    %335 = arith.addf %334, %333 : vector<16x64xf32>
    %336 = arith.mulf %330, %335 : vector<16x64xf32>
    %c1_96 = arith.constant 1 : index
    %c0_97 = arith.constant 0 : index
    %c0_98 = arith.constant 0 : index
    %337 = vector.load %arg6[%c1_96, %c0_97, %c0_98] : memref<2x64x32xf32, #tpu.memory_space<vmem>>, vector<1x64x32xf32>
    %338 = vector.shape_cast %337 : vector<1x64x32xf32> to vector<64x32xf32>
    %cst_99 = arith.constant dense<0.000000e+00> : vector<16x32xf32>
    %339 = tpu.matmul %336, %338, %cst_99 {dimension_numbers = #tpu.dot_dimension_numbers<[1], [0], [0], [1], [0, 0, 1, 1], [], []>} : vector<16x64xf32>, vector<64x32xf32>, vector<16x32xf32> -> vector<16x32xf32>
    %340 = vector.broadcast %203 : vector<1x32xf32> to vector<16x32xf32>
    %341 = arith.addf %339, %340 : vector<16x32xf32>
    %342 = arith.addf %341, %323 : vector<16x32xf32>
    %cst_100 = arith.constant dense<0.000000e+00> : vector<16xf32>
    %343 = vector.multi_reduction <add>, %342, %cst_100 [1] : vector<16x32xf32> to vector<16xf32>
    %344 = vector.shape_cast %343 : vector<16xf32> to vector<16x1xf32>
    %cst_101 = arith.constant 3.200000e+01 : f32
    %345 = vector.broadcast %cst_101 : f32 to vector<16x1xf32>
    %346 = arith.divf %344, %345 : vector<16x1xf32>
    %347 = vector.broadcast %346 : vector<16x1xf32> to vector<16x32xf32>
    %348 = arith.subf %342, %347 : vector<16x32xf32>
    %349 = arith.mulf %348, %348 : vector<16x32xf32>
    %cst_102 = arith.constant dense<0.000000e+00> : vector<16xf32>
    %350 = vector.multi_reduction <add>, %349, %cst_102 [1] : vector<16x32xf32> to vector<16xf32>
    %351 = vector.shape_cast %350 : vector<16xf32> to vector<16x1xf32>
    %cst_103 = arith.constant 3.200000e+01 : f32
    %352 = vector.broadcast %cst_103 : f32 to vector<16x1xf32>
    %353 = arith.divf %351, %352 : vector<16x1xf32>
    %354 = vector.broadcast %346 : vector<16x1xf32> to vector<16x32xf32>
    %355 = arith.subf %342, %354 : vector<16x32xf32>
    %cst_104 = arith.constant 9.99999996E-13 : f32
    %356 = vector.broadcast %cst_104 : f32 to vector<16x1xf32>
    %357 = arith.addf %353, %356 : vector<16x1xf32>
    %358 = math.rsqrt %357 : vector<16x1xf32>
    %359 = vector.broadcast %358 : vector<16x1xf32> to vector<16x32xf32>
    %360 = arith.mulf %355, %359 : vector<16x32xf32>
    %361 = vector.broadcast %204 : vector<1x32xf32> to vector<16x32xf32>
    %362 = arith.mulf %360, %361 : vector<16x32xf32>
    %363 = vector.broadcast %205 : vector<1x32xf32> to vector<16x32xf32>
    %364 = arith.addf %362, %363 : vector<16x32xf32>
    %365 = vector.extract_strided_slice %364 {offsets = [0, 0], sizes = [1, 32], strides = [1, 1]} : vector<16x32xf32> to vector<1x32xf32>
    %366 = vector.extract_strided_slice %364 {offsets = [8, 0], sizes = [1, 32], strides = [1, 1]} : vector<16x32xf32> to vector<1x32xf32>
    %367 = tpu.concatenate %365, %366 in 0 : vector<1x32xf32>, vector<1x32xf32> -> vector<2x32xf32>
    %c0_105 = arith.constant 0 : index
    %c0_106 = arith.constant 0 : index
    %368 = vector.load %arg9[%c0_105, %c0_106] : memref<80x32xf32, #tpu.memory_space<vmem>>, vector<32x32xf32>
    %cst_107 = arith.constant dense<0.000000e+00> : vector<2x32xf32>
    %369 = tpu.matmul %367, %368, %cst_107 {dimension_numbers = #tpu.dot_dimension_numbers<[1], [0], [0], [1], [0, 0, 1, 1], [], []>} : vector<2x32xf32>, vector<32x32xf32>, vector<2x32xf32> -> vector<2x32xf32>
    %370 = vector.extract_strided_slice %0 {offsets = [2, 0], sizes = [1, 32], strides = [1, 1]} : vector<8x128xf32> to vector<1x32xf32>
    %371 = vector.broadcast %370 : vector<1x32xf32> to vector<2x32xf32>
    %372 = arith.addf %369, %371 : vector<2x32xf32>
    %373 = math.tanh %372 : vector<2x32xf32>
    %c32 = arith.constant 32 : index
    %c0_108 = arith.constant 0 : index
    %374 = vector.load %arg9[%c32, %c0_108] : memref<80x32xf32, #tpu.memory_space<vmem>>, vector<16x32xf32>
    %c48 = arith.constant 48 : index
    %c0_109 = arith.constant 0 : index
    %375 = vector.load %arg9[%c48, %c0_109] : memref<80x32xf32, #tpu.memory_space<vmem>>, vector<32x32xf32>
    %c0_110 = arith.constant 0 : index
    %c0_111 = arith.constant 0 : index
    %376 = vector.load %arg2[%c0_110, %c0_111] : memref<16x16xf32, #tpu.memory_space<vmem>>, vector<16x16xf32>
    %cst_112 = arith.constant dense<0.000000e+00> : vector<16x32xf32>
    %377 = tpu.matmul %376, %374, %cst_112 {dimension_numbers = #tpu.dot_dimension_numbers<[1], [0], [0], [1], [0, 0, 1, 1], [], []>} : vector<16x16xf32>, vector<16x32xf32>, vector<16x32xf32> -> vector<16x32xf32>
    %378 = vector.extract_strided_slice %0 {offsets = [3, 0], sizes = [1, 32], strides = [1, 1]} : vector<8x128xf32> to vector<1x32xf32>
    %379 = vector.broadcast %378 : vector<1x32xf32> to vector<16x32xf32>
    %380 = arith.addf %377, %379 : vector<16x32xf32>
    %cst_113 = arith.constant 0.000000e+00 : f32
    %381 = vector.broadcast %cst_113 : f32 to vector<16x32xf32>
    %382 = arith.maximumf %380, %381 : vector<16x32xf32>
    %cst_114 = arith.constant dense<0.000000e+00> : vector<16x32xf32>
    %383 = tpu.matmul %382, %375, %cst_114 {dimension_numbers = #tpu.dot_dimension_numbers<[1], [0], [0], [1], [0, 0, 1, 1], [], []>} : vector<16x32xf32>, vector<32x32xf32>, vector<16x32xf32> -> vector<16x32xf32>
    %384 = vector.extract_strided_slice %0 {offsets = [4, 0], sizes = [1, 32], strides = [1, 1]} : vector<8x128xf32> to vector<1x32xf32>
    %385 = vector.broadcast %384 : vector<1x32xf32> to vector<16x32xf32>
    %386 = arith.addf %383, %385 : vector<16x32xf32>
    %387 = vector.extract_strided_slice %0 {offsets = [5, 0], sizes = [1, 32], strides = [1, 1]} : vector<8x128xf32> to vector<1x32xf32>
    %388 = vector.extract_strided_slice %0 {offsets = [6, 0], sizes = [1, 32], strides = [1, 1]} : vector<8x128xf32> to vector<1x32xf32>
    %cst_115 = arith.constant dense<0.000000e+00> : vector<16xf32>
    %389 = vector.multi_reduction <add>, %386, %cst_115 [1] : vector<16x32xf32> to vector<16xf32>
    %390 = vector.shape_cast %389 : vector<16xf32> to vector<16x1xf32>
    %cst_116 = arith.constant 3.200000e+01 : f32
    %391 = vector.broadcast %cst_116 : f32 to vector<16x1xf32>
    %392 = arith.divf %390, %391 : vector<16x1xf32>
    %393 = vector.broadcast %392 : vector<16x1xf32> to vector<16x32xf32>
    %394 = arith.subf %386, %393 : vector<16x32xf32>
    %395 = arith.mulf %394, %394 : vector<16x32xf32>
    %cst_117 = arith.constant dense<0.000000e+00> : vector<16xf32>
    %396 = vector.multi_reduction <add>, %395, %cst_117 [1] : vector<16x32xf32> to vector<16xf32>
    %397 = vector.shape_cast %396 : vector<16xf32> to vector<16x1xf32>
    %cst_118 = arith.constant 3.200000e+01 : f32
    %398 = vector.broadcast %cst_118 : f32 to vector<16x1xf32>
    %399 = arith.divf %397, %398 : vector<16x1xf32>
    %400 = vector.broadcast %392 : vector<16x1xf32> to vector<16x32xf32>
    %401 = arith.subf %386, %400 : vector<16x32xf32>
    %cst_119 = arith.constant 9.99999974E-6 : f32
    %402 = vector.broadcast %cst_119 : f32 to vector<16x1xf32>
    %403 = arith.addf %399, %402 : vector<16x1xf32>
    %404 = math.rsqrt %403 : vector<16x1xf32>
    %405 = vector.broadcast %404 : vector<16x1xf32> to vector<16x32xf32>
    %406 = arith.mulf %401, %405 : vector<16x32xf32>
    %407 = vector.broadcast %387 : vector<1x32xf32> to vector<16x32xf32>
    %408 = arith.mulf %406, %407 : vector<16x32xf32>
    %409 = vector.broadcast %388 : vector<1x32xf32> to vector<16x32xf32>
    %410 = arith.addf %408, %409 : vector<16x32xf32>
    %411 = vector.extract_strided_slice %410 {offsets = [0, 0], sizes = [8, 32], strides = [1, 1]} : vector<16x32xf32> to vector<8x32xf32>
    %cst_120 = arith.constant dense<0.000000e+00> : vector<32xf32>
    %412 = vector.multi_reduction <add>, %411, %cst_120 [0] : vector<8x32xf32> to vector<32xf32>
    %413 = vector.shape_cast %412 : vector<32xf32> to vector<1x32xf32>
    %414 = vector.extract_strided_slice %410 {offsets = [8, 0], sizes = [8, 32], strides = [1, 1]} : vector<16x32xf32> to vector<8x32xf32>
    %cst_121 = arith.constant dense<0.000000e+00> : vector<32xf32>
    %415 = vector.multi_reduction <add>, %414, %cst_121 [0] : vector<8x32xf32> to vector<32xf32>
    %416 = vector.shape_cast %415 : vector<32xf32> to vector<1x32xf32>
    %417 = tpu.concatenate %413, %416 in 0 : vector<1x32xf32>, vector<1x32xf32> -> vector<2x32xf32>
    %cst_122 = arith.constant 1.250000e-01 : f32
    %418 = vector.broadcast %cst_122 : f32 to vector<2x32xf32>
    %419 = arith.mulf %417, %418 : vector<2x32xf32>
    %420 = arith.addf %373, %419 : vector<2x32xf32>
    %c0_123 = arith.constant 0 : index
    %c0_124 = arith.constant 0 : index
    %421 = vector.load %arg10[%c0_123, %c0_124] : memref<32x128xf32, #tpu.memory_space<vmem>>, vector<32x128xf32>
    %cst_125 = arith.constant dense<0.000000e+00> : vector<2x128xf32>
    %422 = tpu.matmul %420, %421, %cst_125 {dimension_numbers = #tpu.dot_dimension_numbers<[1], [0], [0], [1], [0, 0, 1, 1], [], []>} : vector<2x32xf32>, vector<32x128xf32>, vector<2x128xf32> -> vector<2x128xf32>
    %423 = vector.extract_strided_slice %0 {offsets = [7, 0], sizes = [1, 128], strides = [1, 1]} : vector<8x128xf32> to vector<1x128xf32>
    %424 = vector.broadcast %423 : vector<1x128xf32> to vector<2x128xf32>
    %425 = arith.addf %422, %424 : vector<2x128xf32>
    %c0_126 = arith.constant 0 : index
    %c0_127 = arith.constant 0 : index
    %426 = vector.load %arg11[%c0_126, %c0_127] : memref<2x128xf32, #tpu.memory_space<vmem>>, vector<2x128xf32>
    tpu.vector_store %arg11[%c0_126, %c0_127], %425 {strides = array<i32>} : memref<2x128xf32, #tpu.memory_space<vmem>>, vector<2x128xf32>,
    return
  }
}

</mosaic_0001>

<bundles_post_ra>
// kernel: bert_classifier_forward.1
= control target key start
LH: loop header
LB: loop body
LE: loop exit
PB: predicated region body
PF: predicated region fallthrough
CT: control target
= control target key end

     0   :  { %vm42_vm0 = vcmask 261120   ;;  %s5696_s0 = inlined_call_operand.vmem [shape: f32[16,32], index: 0, kind: input, shape index: {}]   ;;  %s5697_s1 = inlined_call_operand.vmem [shape: f32[2,1,8], index: 1, kind: input, shape index: {}]   ;;  %s5698_s2 = inlined_call_operand.vmem [shape: f32[16,16], index: 2, kind: input, shape index: {}]   ;;  %s5699_s3 = inlined_call_operand.vmem [shape: f32[2,32,96], index: 3, kind: input, shape index: {}]   ;;  %s5700_s4 = inlined_call_operand.vmem [shape: f32[2,32,32], index: 4, kind: input, shape index: {}]   ;;  %s5701_s5 = inlined_call_operand.vmem [shape: f32[2,32,64], index: 5, kind: input, shape index: {}]   ;;  %s5702_s6 = inlined_call_operand.vmem [shape: f32[2,64,32], index: 6, kind: input, shape index: {}]   ;;  %s5703_s7 = inlined_call_operand.vmem [shape: f32[2,8,128], index: 7, kind: input, shape index: {}]   ;;  %s5704_s8 = inlined_call_operand.vmem [shape: f32[8,128], index: 8, kind: input, shape index: {}]   ;;  %s5705_s9 = inlined_call_operand.vmem [shape: f32[80,32], index: 9, kind: input, shape index: {}]   ;;  %s5706_s10 = inlined_call_operand.vmem [shape: f32[32,128], index: 10, kind: input, shape index: {}]   ;;  %s5707_s11 = inlined_call_operand.hbm [shape: f32[2,128], index: 11, kind: output, shape index: {}]  }
   0x1   :  { %v40_v0 = vld [vmem:[%s5696_s0] sm:$0xff]  ;;  %v41_v1 = vld [vmem:[%s5696_s0 + $0x8] sm:$0xff] }
   0x2   :  { %16 = vsyncpa [#allocation3], 0  ;;  %v43_v2 = vsel %vm42_vm0, %v40_v0, 0.0  ;;  %v46_v3 = vsel %vm42_vm0, %v41_v1, 0.0  ;;  %v85_v14 = vld [vmem:[%s5699_s3] sm:$0xff]  ;;  %v86_v15 = vld [vmem:[%s5699_s3 + $0x8] sm:$0xff]  ;;  %v70_v22 = vlaneseq }
   0x3   :  { %44 = vadd.xlane.f32.xlu0 %v43_v2  ;;  %v87_v16 = vld [vmem:[%s5699_s3 + $0x10] sm:$0xff]  ;;  %v4658_v17 = vpack.c.bf16 %v86_v15, %v85_v14  ;;  %v88_v18 = vld [vmem:[%s5699_s3 + $0x18] sm:$0xff]  ;;  %v39_v29 = vld [vmem:[%s5704_s8] sm:$0xff]  ;;  %v4905_v41 = vmov 0.0   ;;  %vm4906_vm1 = vmmov 0   ;;  %s4907_s13 = smov 96  }
   0x4   :  { %v4662_v19 = vpack.c.bf16 %v88_v18, %v87_v16  ;;  %v5005_v26 = vshrl.u32 %v70_v22, 7  ;;  %4365 = vmatprep.subr.mxu1 %v4905_v41  ;;  %4367 = vmatprep.mubr.msk.f32.mxu1 %vm4906_vm1, %v4905_v41  ;;  %v5035_v42 = vld [vmem:[%s5703_s7] sm:$0xff]  ;;  %vm189_vm2 = vcmask 64512   ;;  %s4908_s18 = smov 64   ;;  %s4909_s19 = smov 88   ;;  %vm1534_vm3 = vcmask 195584  }
   0x5   :  { %4659 = vmatprep.subr.bf16.mxu0 %v4658_v17  ;;  %v5062_v50 = vld [vmem:[%s5697_s1] ss:$0 sm:$0xff]  ;;  %v5068_v54 = vld [vmem:[%s5697_s1 + $0x1] ss:$0 sm:$0xff]  ;;  %s4910_s20 = smov 120   ;;  %s4911_s0 = smov 56  }
   0x6   :  { %4661 = vmatpush3.bf16.msra.mxu0 %v4658_v17  ;;  %v5008_v28 = vsub.s32 0, %v5005_v26  ;;  %v5014_v30 = vsub.s32 1, %v5005_v26  ;;  %s4912_s21 = smov 80   ;;  %s4913_s22 = smov 112   ;;  %vm1531_vm4 = vcmask 130048   ;;  %vm1777_vm5 = vcmask 523264  }
   0x7   :  { %47 = vadd.xlane.f32.xlu0 %v46_v3  ;;  %4663 = vmatprep.subr.bf16.mxu0 %v4662_v19  ;;  %s4914_s23 = smov 48   ;;  %s4915_s24 = smov 72   ;;  %vm3706_vm6 = vcmask 1040384  }
   0x8   :  { %v73_v31 = vrot.slane %v39_v29, %v5008_v28  ;;  %v79_v34 = vrot.slane %v39_v29, %v5014_v30  ;;  %v92_v43 = vrot.slane %v5035_v42, %v5008_v28  ;;  %s4916_s25 = smov 104   ;;  %s4917_s26 = smov 40  }
   0x9   :  { %s4918_s27 = smov 8   ;;  %s5708_s28 = smov 16  }
   0xa   :  { %4665 = vmatpush3.bf16.msra.mxu0 %v4662_v19  ;;  %s5710_s29 = smov 24  }
   0xb   :  { %4375 = vmatprep.subr.mxu0 %v4905_v41 }
  0x90   :  { %v45_v4 = vpop.xlane.xlu0 %44 }
  0x91   :  { %v50_v5 = vmul.f32 0.03125, %v45_v4 }
  0x93   :  { %v52_v6 = vsub.f32 %v40_v0, %v50_v5 }
  0x94   :  { %v48_v7 = vpop.xlane.xlu0 %47 }
  0x95   :  { %v51_v8 = vmul.f32 0.03125, %v48_v7  ;;  %v54_v9 = vmul.f32 %v52_v6, %v52_v6 }
  0x97   :  { %v53_v10 = vsub.f32 %v41_v1, %v51_v8  ;;  %v56_v11 = vsel %vm42_vm0, %v54_v9, 0.0 }
  0x98   :  { %57 = vadd.xlane.f32.xlu1 %v56_v11 }
  0x99   :  { %v55_v12 = vmul.f32 %v53_v10, %v53_v10 }
  0x9b   :  { %v59_v13 = vsel %vm42_vm0, %v55_v12, 0.0 }
  0x9c   :  { %60 = vadd.xlane.f32.xlu1 %v59_v13 }
 0x125   :  { %v58_v20 = vpop.xlane.xlu1 %57 }
 0x126   :  { %v62_v21 = vmul.f32 0.03125, %v58_v20 }
 0x128   :  { %v64_v23 = vadd.f32 1e-12, %v62_v21 }
 0x129   :  { %v61_v24 = vpop.xlane.xlu1 %60 }
 0x12a   :  { %4780 = vrsqrt.f32 %v64_v23  ;;  %v63_v25 = vmul.f32 0.03125, %v61_v24 }
 0x12c   :  { %v65_v27 = vadd.f32 1e-12, %v63_v25 }
 0x12e   :  { %4782 = vrsqrt.f32 %v65_v27 }
 0x134   :  { %v4781_v32 = vpop.eup %4780 }
 0x135   :  { %v68_v33 = vmul.f32 %v4781_v32, %v52_v6 }
 0x137   :  { %v74_v35 = vmul.f32 %v73_v31, %v68_v33 }
 0x138   :  { %v4783_v36 = vpop.eup %4782 }
 0x139   :  { %v69_v37 = vmul.f32 %v4783_v36, %v53_v10  ;;  %v5018_v38 = vadd.f32 %v79_v34, %v74_v35 }
 0x13b   :  { %v75_v39 = vmul.f32 %v73_v31, %v69_v37  ;;  %4362 = vmatprep.mubr.msk.f32.mxu0 %vm42_vm0, %v5018_v38 }
 0x13d   :  { %v5022_v40 = vadd.f32 %v79_v34, %v75_v39 }
 0x13f   :  { %4363 = vmatmul.mubr.msk.f32.vlgmr.msra.gmra.mrb[0].mxu0 %vm42_vm0, %v5022_v40 }
 0x140   :  { %4377 = vmatprep.mubr.msk.f32.mxu0 %vm4906_vm1, %v4905_v41 }
 0x212   :  { %v4364_v44 = vpop.f32.mrb[0].mxu0 }
 0x213   :  { %v5039_v45 = vadd.f32 %v4364_v44, %v92_v43  ;;  %v165_v46 = vpop.f32.mrb[1].mxu0 }
 0x214   :  { %v5041_v47 = vadd.f32 %v165_v46, %v92_v43 }
 0x215   :  { %265 = vrot.lane.b32.xlu1 %v5039_v45, %s4907_s13 }
 0x216   :  { %187 = vrot.lane.b32.xlu0 %v5041_v47, %s4907_s13 }
 0x287   :  { %v266_v49 = vpop.permute.xlu1 %265 }
 0x288   :  { %v188_v48 = vpop.permute.xlu0 %187 }
 0x289   :  { %4366 = vmatpush3.xpose.msk.msra.mxu1 %vm189_vm2, %v188_v48 }
 0x28a   :  { %4370 = vmatprep.subr.mxu1 %v4905_v41 }
 0x28c   :  { %4368 = vmatmul.mubr.msk.f32.vlgmr.msra.gmra.mrb[0].mxu1 %vm189_vm2, %v5041_v47 }
 0x28d   :  { %4371 = vmatpush3.xpose.msk.msra.mxu1 %vm189_vm2, %v266_v49  ;;  %4372 = vmatprep.mubr.msk.f32.mxu1 %vm4906_vm1, %v4905_v41 }
 0x28e   :  { %4380 = vmatprep.subr.mxu1 %v4905_v41 }
 0x290   :  { %4373 = vmatmul.mubr.msk.f32.vlgmr.msra.gmra.mrb[2].mxu1 %vm189_vm2, %v5039_v45 }
 0x291   :  { %4382 = vmatprep.mubr.msk.f32.mxu1 %vm4906_vm1, %v4905_v41 }
 0x35f   :  { %v260_v51 = vpop.f32.mrb[0].mxu1 }
 0x360   :  { %v261_v52 = vadd.f32 %v5062_v50, %v260_v51  ;;  %v4369_v53 = vpop.f32.mrb[1].mxu1 }
 0x362   :  { %v341_v55 = vsel %vm189_vm2, %v261_v52, -inf }
 0x363   :  { %342 = vmax.xlane.f32.xlu1 %v341_v55  ;;  %v337_v56 = vpop.f32.mrb[2].mxu1 }
 0x364   :  { %v338_v57 = vadd.f32 %v5068_v54, %v337_v56  ;;  %v4374_v58 = vpop.f32.mrb[3].mxu1 }
 0x366   :  { %v344_v59 = vsel %vm189_vm2, %v338_v57, -inf }
 0x367   :  { %345 = vmax.xlane.f32.xlu0 %v344_v59 }
 0x374   :  { %439 = vrot.lane.b32.xlu1 %v5039_v45, %s4908_s18 }
 0x378   :  { %517 = vrot.lane.b32.xlu1 %v5041_v47, %s4909_s19 }
 0x37c   :  { %595 = vrot.lane.b32.xlu1 %v5039_v45, %s4909_s19 }
 0x37d   :  { %363 = vrot.lane.b32.xlu0 %v5041_v47, %s4908_s18 }
 0x3f0   :  { %v343_v60 = vpop.xlane.xlu1 %342 }
 0x3f1   :  { %v347_v61 = vsub.f32 %v261_v52, %v343_v60 }
 0x3f3   :  { %v349_v62 = vmul.f32 1.442695, %v347_v61 }
 0x3f4   :  { %v440_v63 = vpop.permute.xlu1 %439  ;;  %v346_v0 = vpop.xlane.xlu0 %345 }
 0x3f5   :  { %4784 = vpow2.f32 %v349_v62  ;;  %v348_v1 = vsub.f32 %v338_v57, %v346_v0  ;;  %4381 = vmatpush3.msra.mxu1 %v440_v63 }
 0x3f6   :  { %4390 = vmatprep.subr.mxu1 %v4905_v41 }
 0x3f7   :  { %v351_v2 = vmul.f32 1.442695, %v348_v1 }
 0x3f8   :  { %v364_v3 = vpop.permute.xlu0 %363  ;;  %v518_v8 = vpop.permute.xlu1 %517 }
 0x3f9   :  { %4786 = vpow2.f32 %v351_v2  ;;  %4376 = vmatpush3.msra.mxu0 %v364_v3 }
 0x3fa   :  { %4385 = vmatprep.subr.mxu0 %v4905_v41 }
 0x3fc   :  { %v596_v9 = vpop.permute.xlu1 %595 }
 0x3ff   :  { %v4785_v4 = vpop.eup %4784 }
 0x400   :  { %v353_v5 = vsel %vm189_vm2, %v4785_v4, 0.0 }
 0x401   :  { %354 = vadd.xlane.f32.xlu0 %v353_v5 }
 0x403   :  { %v4787_v6 = vpop.eup %4786 }
 0x404   :  { %v356_v7 = vsel %vm189_vm2, %v4787_v6, 0.0 }
 0x405   :  { %357 = vadd.xlane.f32.xlu1 %v356_v7 }
 0x416   :  { %593 = vrot.lane.b32.xlu1 %v5039_v45, %s4910_s20 }
 0x417   :  { %515 = vrot.lane.b32.xlu0 %v5041_v47, %s4910_s20 }
 0x48e   :  { %v355_v10 = vpop.xlane.xlu0 %354 }
 0x48f   :  { %4788 = vrcp.f32 %v355_v10 }
 0x492   :  { %v358_v11 = vpop.xlane.xlu1 %357  ;;  %v516_v16 = vpop.permute.xlu0 %515 }
 0x493   :  { %4790 = vrcp.f32 %v358_v11 }
 0x496   :  { %v594_v17 = vpop.permute.xlu1 %593 }
 0x499   :  { %v4789_v12 = vpop.eup %4788 }
 0x49a   :  { %v361_v13 = vmul.f32 %v4789_v12, %v4785_v4 }
 0x49c   :  { %4378 = vmatmul.mubr.msk.f32.vlgmr.msra.gmra.mrb[2].mxu0 %vm189_vm2, %v361_v13 }
 0x49d   :  { %v4791_v14 = vpop.eup %4790  ;;  %4386 = vmatpush3.xpose.msk.msra.mxu0 %vm189_vm2, %v518_v8  ;;  %4387 = vmatprep.mubr.msk.f32.mxu0 %vm4906_vm1, %v4905_v41 }
 0x49e   :  { %v362_v15 = vmul.f32 %v4791_v14, %v4787_v6  ;;  %4395 = vmatprep.subr.mxu0 %v4905_v41 }
 0x4a0   :  { %4383 = vmatmul.mubr.msk.f32.vlgmr.msra.gmra.mrb[4].mxu1 %vm189_vm2, %v362_v15  ;;  %4388 = vmatmul.mubr.msk.f32.vlgmr.msra.gmra.mrb[4].mxu0 %vm189_vm2, %v516_v16 }
 0x4a1   :  { %4391 = vmatpush3.xpose.msk.msra.mxu1 %vm189_vm2, %v596_v9  ;;  %4392 = vmatprep.mubr.msk.f32.mxu1 %vm4906_vm1, %v4905_v41 }
 0x4a2   :  { %4400 = vmatprep.subr.mxu1 %v4905_v41  ;;  %4397 = vmatprep.mubr.msk.f32.mxu0 %vm4906_vm1, %v4905_v41 }
 0x4a4   :  { %4393 = vmatmul.mubr.msk.f32.vlgmr.msra.gmra.mrb[6].mxu1 %vm189_vm2, %v594_v17 }
 0x4a5   :  { %4402 = vmatprep.mubr.msk.f32.mxu1 %vm4906_vm1, %v4905_v41 }
 0x56f   :  { %v5105_v18 = vpop.f32.mrb[2].mxu0 }
 0x570   :  { %v4379_v19 = vpop.f32.mrb[3].mxu0 }
 0x573   :  { %v5107_v20 = vpop.f32.mrb[4].mxu1  ;;  %v589_v21 = vpop.f32.mrb[4].mxu0 }
 0x574   :  { %v590_v22 = vadd.f32 %v5062_v50, %v589_v21  ;;  %v4384_v23 = vpop.f32.mrb[5].mxu1  ;;  %v4389_v24 = vpop.f32.mrb[5].mxu0 }
 0x576   :  { %v671_v25 = vsel %vm189_vm2, %v590_v22, -inf }
 0x577   :  { %672 = vmax.xlane.f32.xlu0 %v671_v25  ;;  %v667_v27 = vpop.f32.mrb[6].mxu1 }
 0x578   :  { %v668_v29 = vadd.f32 %v5068_v54, %v667_v27  ;;  %v4394_v31 = vpop.f32.mrb[7].mxu1 }
 0x57a   :  { %v674_v32 = vsel %vm189_vm2, %v668_v29, -inf }
 0x57b   :  { %675 = vmax.xlane.f32.xlu1 %v674_v32 }
 0x58c   :  { %769 = vrot.lane.b32.xlu1 %v5039_v45, %s4911_s0 }
 0x58d   :  { %693 = vrot.lane.b32.xlu0 %v5041_v47, %s4911_s0 }
 0x590   :  { %847 = vrot.lane.b32.xlu1 %v5041_v47, %s4912_s21 }
 0x594   :  { %925 = vrot.lane.b32.xlu1 %v5039_v45, %s4912_s21 }
 0x598   :  { %923 = vrot.lane.b32.xlu1 %v5039_v45, %s4913_s22 }
 0x604   :  { %v673_v33 = vpop.xlane.xlu0 %672 }
 0x605   :  { %v677_v34 = vsub.f32 %v590_v22, %v673_v33 }
 0x607   :  { %v679_v35 = vmul.f32 1.442695, %v677_v34 }
 0x608   :  { %v694_v36 = vpop.permute.xlu0 %693  ;;  %v676_v37 = vpop.xlane.xlu1 %675 }
 0x609   :  { %4792 = vpow2.f32 %v679_v35  ;;  %v678_v39 = vsub.f32 %v668_v29, %v676_v37  ;;  %4396 = vmatpush3.msra.mxu0 %v694_v36 }
 0x60a   :  { %4405 = vmatprep.subr.mxu0 %v4905_v41 }
 0x60b   :  { %v681_v43 = vmul.f32 1.442695, %v678_v39 }
 0x60c   :  { %v770_v44 = vpop.permute.xlu1 %769 }
 0x60d   :  { %4794 = vpow2.f32 %v681_v43  ;;  %4401 = vmatpush3.msra.mxu1 %v770_v44 }
 0x60e   :  { %4410 = vmatprep.subr.mxu1 %v4905_v41 }
 0x610   :  { %v848_v55 = vpop.permute.xlu1 %847 }
 0x613   :  { %v4793_v46 = vpop.eup %4792 }
 0x614   :  { %v683_v48 = vsel %vm189_vm2, %v4793_v46, 0.0  ;;  %v926_v59 = vpop.permute.xlu1 %925 }
 0x615   :  { %684 = vadd.xlane.f32.xlu0 %v683_v48 }
 0x617   :  { %v4795_v49 = vpop.eup %4794 }
 0x618   :  { %v686_v51 = vsel %vm189_vm2, %v4795_v49, 0.0  ;;  %v924_v62 = vpop.permute.xlu1 %923 }
 0x619   :  { %687 = vadd.xlane.f32.xlu0 %v686_v51 }
 0x62f   :  { %845 = vrot.lane.b32.xlu0 %v5041_v47, %s4913_s22 }
 0x6a2   :  { %v685_v52 = vpop.xlane.xlu0 %684 }
 0x6a3   :  { %4796 = vrcp.f32 %v685_v52 }
 0x6a6   :  { %v688_v53 = vpop.xlane.xlu0 %687 }
 0x6a7   :  { %4798 = vrcp.f32 %v688_v53 }
 0x6aa   :  { %v846_v61 = vpop.permute.xlu0 %845 }
 0x6ad   :  { %v4797_v56 = vpop.eup %4796 }
 0x6ae   :  { %v691_v57 = vmul.f32 %v4797_v56, %v4793_v46 }
 0x6b0   :  { %4398 = vmatmul.mubr.msk.f32.vlgmr.msra.gmra.mrb[6].mxu0 %vm189_vm2, %v691_v57 }
 0x6b1   :  { %v4799_v58 = vpop.eup %4798  ;;  %4406 = vmatpush3.xpose.msk.msra.mxu0 %vm189_vm2, %v848_v55  ;;  %4407 = vmatprep.mubr.msk.f32.mxu0 %vm4906_vm1, %v4905_v41 }
 0x6b2   :  { %v692_v60 = vmul.f32 %v4799_v58, %v4795_v49  ;;  %4415 = vmatprep.subr.mxu0 %v4905_v41 }
 0x6b4   :  { %4403 = vmatmul.mubr.msk.f32.vlgmr.msra.gmra.mrb[8].mxu1 %vm189_vm2, %v692_v60  ;;  %4408 = vmatmul.mubr.msk.f32.vlgmr.msra.gmra.mrb[8].mxu0 %vm189_vm2, %v846_v61 }
 0x6b5   :  { %4411 = vmatpush3.xpose.msk.msra.mxu1 %vm189_vm2, %v926_v59  ;;  %4412 = vmatprep.mubr.msk.f32.mxu1 %vm4906_vm1, %v4905_v41 }
 0x6b6   :  { %4420 = vmatprep.subr.mxu1 %v4905_v41  ;;  %4417 = vmatprep.mubr.msk.f32.mxu0 %vm4906_vm1, %v4905_v41 }
 0x6b8   :  { %4413 = vmatmul.mubr.msk.f32.vlgmr.msra.gmra.mrb[10].mxu1 %vm189_vm2, %v924_v62 }
 0x6b9   :  { %4422 = vmatprep.mubr.msk.f32.mxu1 %vm4906_vm1, %v4905_v41 }
 0x783   :  { %v5145_v63 = vpop.f32.mrb[6].mxu0 }
 0x784   :  { %v4399_v0 = vpop.f32.mrb[7].mxu0 }
 0x787   :  { %v5147_v1 = vpop.f32.mrb[8].mxu1  ;;  %v919_v2 = vpop.f32.mrb[8].mxu0 }
 0x788   :  { %v920_v3 = vadd.f32 %v5062_v50, %v919_v2  ;;  %v4404_v4 = vpop.f32.mrb[9].mxu1  ;;  %v4409_v5 = vpop.f32.mrb[9].mxu0 }
 0x78a   :  { %v1001_v6 = vsel %vm189_vm2, %v920_v3, -inf }
 0x78b   :  { %1002 = vmax.xlane.f32.xlu0 %v1001_v6  ;;  %v997_v7 = vpop.f32.mrb[10].mxu1 }
 0x78c   :  { %v998_v8 = vadd.f32 %v5068_v54, %v997_v7  ;;  %v4414_v9 = vpop.f32.mrb[11].mxu1 }
 0x78e   :  { %v1004_v10 = vsel %vm189_vm2, %v998_v8, -inf }
 0x78f   :  { %1005 = vmax.xlane.f32.xlu1 %v1004_v10 }
 0x7a0   :  { %1099 = vrot.lane.b32.xlu1 %v5039_v45, %s4914_s23 }
 0x7a1   :  { %1023 = vrot.lane.b32.xlu0 %v5041_v47, %s4914_s23 }
 0x7a4   :  { %1177 = vrot.lane.b32.xlu1 %v5041_v47, %s4915_s24 }
 0x7a8   :  { %1255 = vrot.lane.b32.xlu1 %v5039_v45, %s4915_s24 }
 0x7ac   :  { %1253 = vrot.lane.b32.xlu1 %v5039_v45, %s4916_s25 }
 0x818   :  { %v1003_v11 = vpop.xlane.xlu0 %1002 }
 0x819   :  { %v1007_v12 = vsub.f32 %v920_v3, %v1003_v11  ;;  %v1538_v11 = vld [vmem:[%s5700_s4 + $0x8] sm:$0xff] }
 0x81b   :  { %v1009_v13 = vmul.f32 1.442695, %v1007_v12 }
 0x81c   :  { %v1024_v14 = vpop.permute.xlu0 %1023  ;;  %v1006_v15 = vpop.xlane.xlu1 %1005 }
 0x81d   :  { %4800 = vpow2.f32 %v1009_v13  ;;  %v1008_v16 = vsub.f32 %v998_v8, %v1006_v15  ;;  %4416 = vmatpush3.msra.mxu0 %v1024_v14  ;;  %v1539_v13 = vld [vmem:[%s5700_s4 + $0x10] sm:$0xff]  ;;  %v1540_v14 = vld [vmem:[%s5700_s4 + $0x18] sm:$0xff] }
 0x81e   :  { %4425 = vmatprep.subr.mxu0 %v4905_v41  ;;  %v4670_v15 = vpack.c.bf16 %v1540_v14, %v1539_v13 }
 0x81f   :  { %v1011_v17 = vmul.f32 1.442695, %v1008_v16 }
 0x820   :  { %v1100_v19 = vpop.permute.xlu1 %1099 }
 0x821   :  { %4802 = vpow2.f32 %v1011_v17  ;;  %4421 = vmatpush3.msra.mxu1 %v1100_v19 }
 0x822   :  { %4430 = vmatprep.subr.mxu1 %v4905_v41 }
 0x824   :  { %v1178_v29 = vpop.permute.xlu1 %1177 }
 0x827   :  { %v4801_v21 = vpop.eup %4800 }
 0x828   :  { %v1013_v22 = vsel %vm189_vm2, %v4801_v21, 0.0  ;;  %v1256_v34 = vpop.permute.xlu1 %1255 }
 0x829   :  { %1014 = vadd.xlane.f32.xlu0 %v1013_v22 }
 0x82b   :  { %v4803_v23 = vpop.eup %4802 }
 0x82c   :  { %v1016_v24 = vsel %vm189_vm2, %v4803_v23, 0.0  ;;  %v1254_v37 = vpop.permute.xlu1 %1253 }
 0x82d   :  { %1017 = vadd.xlane.f32.xlu0 %v1016_v24 }
 0x843   :  { %1175 = vrot.lane.b32.xlu0 %v5041_v47, %s4916_s25 }
 0x8b6   :  { %v1015_v25 = vpop.xlane.xlu0 %1014 }
 0x8b7   :  { %4804 = vrcp.f32 %v1015_v25 }
 0x8ba   :  { %v1018_v27 = vpop.xlane.xlu0 %1017 }
 0x8bb   :  { %4806 = vrcp.f32 %v1018_v27 }
 0x8be   :  { %v1176_v36 = vpop.permute.xlu0 %1175 }
 0x8c1   :  { %v4805_v31 = vpop.eup %4804 }
 0x8c2   :  { %v1021_v32 = vmul.f32 %v4805_v31, %v4801_v21 }
 0x8c4   :  { %4418 = vmatmul.mubr.msk.f32.vlgmr.msra.gmra.mrb[10].mxu0 %vm189_vm2, %v1021_v32 }
 0x8c5   :  { %v4807_v33 = vpop.eup %4806  ;;  %4426 = vmatpush3.xpose.msk.msra.mxu0 %vm189_vm2, %v1178_v29  ;;  %4427 = vmatprep.mubr.msk.f32.mxu0 %vm4906_vm1, %v4905_v41 }
 0x8c6   :  { %v1022_v35 = vmul.f32 %v4807_v33, %v4803_v23  ;;  %4435 = vmatprep.subr.mxu0 %v4905_v41 }
 0x8c8   :  { %4423 = vmatmul.mubr.msk.f32.vlgmr.msra.gmra.mrb[12].mxu1 %vm189_vm2, %v1022_v35  ;;  %4428 = vmatmul.mubr.msk.f32.vlgmr.msra.gmra.mrb[12].mxu0 %vm189_vm2, %v1176_v36 }
 0x8c9   :  { %4431 = vmatpush3.xpose.msk.msra.mxu1 %vm189_vm2, %v1256_v34  ;;  %4432 = vmatprep.mubr.msk.f32.mxu1 %vm4906_vm1, %v4905_v41 }
 0x8ca   :  { %4440 = vmatprep.subr.mxu1 %v4905_v41  ;;  %4437 = vmatprep.mubr.msk.f32.mxu0 %vm4906_vm1, %v4905_v41 }
 0x8cc   :  { %4433 = vmatmul.mubr.msk.f32.vlgmr.msra.gmra.mrb[14].mxu1 %vm189_vm2, %v1254_v37 }
 0x8cd   :  { %4442 = vmatprep.mubr.msk.f32.mxu1 %vm4906_vm1, %v4905_v41 }
 0x997   :  { %v1095_v39 = vpop.f32.mrb[10].mxu0 }
 0x998   :  { %v4419_v43 = vpop.f32.mrb[11].mxu0 }
 0x99b   :  { %v1171_v44 = vpop.f32.mrb[12].mxu1  ;;  %v1249_v46 = vpop.f32.mrb[12].mxu0 }
 0x99c   :  { %v1250_v48 = vadd.f32 %v5062_v50, %v1249_v46  ;;  %v4424_v49 = vpop.f32.mrb[13].mxu1  ;;  %v4429_v51 = vpop.f32.mrb[13].mxu0 }
 0x99e   :  { %v1331_v52 = vsel %vm189_vm2, %v1250_v48, -inf }
 0x99f   :  { %1332 = vmax.xlane.f32.xlu0 %v1331_v52  ;;  %v1327_v53 = vpop.f32.mrb[14].mxu1 }
 0x9a0   :  { %v1328_v55 = vadd.f32 %v5068_v54, %v1327_v53  ;;  %v4434_v56 = vpop.f32.mrb[15].mxu1 }
 0x9a2   :  { %v1334_v57 = vsel %vm189_vm2, %v1328_v55, -inf }
 0x9a3   :  { %1335 = vmax.xlane.f32.xlu1 %v1334_v57 }
 0x9b4   :  { %1429 = vrot.lane.b32.xlu1 %v5039_v45, %s4917_s26 }
 0x9b8   :  { %1507 = vrot.lane.b32.xlu1 %v5145_v63, %s4918_s27 }
 0x9bc   :  { %1509 = vrot.lane.b32.xlu1 %v5147_v1, %s4918_s27 }
 0x9c0   :  { %1517 = vrot.lane.b32.xlu1 %v1171_v44, %s5708_s28 }
 0xa2c   :  { %v1333_v58 = vpop.xlane.xlu0 %1332 }
 0xa2d   :  { %v1337_v59 = vsub.f32 %v1250_v48, %v1333_v58 }
 0xa2f   :  { %v1339_v60 = vmul.f32 1.442695, %v1337_v59 }
 0xa30   :  { %v1336_v61 = vpop.xlane.xlu1 %1335 }
 0xa31   :  { %4808 = vpow2.f32 %v1339_v60  ;;  %v1338_v62 = vsub.f32 %v1328_v55, %v1336_v61  ;;  %v1667_v61 = vld [vmem:[%s5701_s5 + $0x8] sm:$0xff] }
 0xa33   :  { %v1341_v0 = vmul.f32 1.442695, %v1338_v62 }
 0xa34   :  { %v1430_v2 = vpop.permute.xlu1 %1429 }
 0xa35   :  { %4810 = vpow2.f32 %v1341_v0  ;;  %4441 = vmatpush3.msra.mxu1 %v1430_v2  ;;  %v1668_v0 = vld [vmem:[%s5701_s5 + $0x10] sm:$0xff]  ;;  %v1669_v2 = vld [vmem:[%s5701_s5 + $0x18] sm:$0xff] }
 0xa38   :  { %v1508_v22 = vpop.permute.xlu1 %1507 }
 0xa39   :  { %v1529_v25 = vsel %vm189_vm2, %v5105_v18, %v1508_v22  ;;  %v1544_v18 = vrot.slane %v5035_v42, %v5014_v30 }
 0xa3b   :  { %v4809_v45 = vpop.eup %4808 }
 0xa3c   :  { %v1343_v3 = vsel %vm189_vm2, %v4809_v45, 0.0  ;;  %v1510_v23 = vpop.permute.xlu1 %1509 }
 0xa3d   :  { %1344 = vadd.xlane.f32.xlu0 %v1343_v3  ;;  %v1530_v33 = vsel %vm189_vm2, %v5107_v20, %v1510_v23  ;;  %v1767_v23 = vld [vmem:[%s5702_s6 + $0x10] sm:$0xff] }
 0xa3f   :  { %v4811_v63 = vpop.eup %4810 }
 0xa40   :  { %v1346_v1 = vsel %vm189_vm2, %v4811_v63, 0.0  ;;  %v1518_v27 = vpop.permute.xlu1 %1517 }
 0xa41   :  { %1347 = vadd.xlane.f32.xlu0 %v1346_v1  ;;  %v1533_v34 = vsel %vm1531_vm4, %v1530_v33, %v1518_v27  ;;  %v1769_v27 = vld [vmem:[%s5702_s6 + $0x20] sm:$0xff]  ;;  %v1772_v33 = vld [vmem:[%s5702_s6 + $0x38] sm:$0xff] }
 0xa57   :  { %1353 = vrot.lane.b32.xlu0 %v5041_v47, %s4917_s26  ;;  %v1537_v47 = vld [vmem:[%s5700_s4] sm:$0xff] }
 0xa58   :  { %v4666_v12 = vpack.c.bf16 %v1538_v11, %v1537_v47 }
 0xa5b   :  { %1515 = vrot.lane.b32.xlu0 %v1095_v39, %s5708_s28 }
 0xaca   :  { %v1345_v4 = vpop.xlane.xlu0 %1344 }
 0xacb   :  { %4812 = vrcp.f32 %v1345_v4 }
 0xace   :  { %v1348_v5 = vpop.xlane.xlu0 %1347 }
 0xacf   :  { %4814 = vrcp.f32 %v1348_v5 }
 0xad2   :  { %v1354_v6 = vpop.permute.xlu0 %1353 }
 0xad3   :  { %4436 = vmatpush3.msra.mxu0 %v1354_v6 }
 0xad4   :  { %4667 = vmatprep.subr.bf16.mxu0 %v4666_v12 }
 0xad5   :  { %v4813_v7 = vpop.eup %4812 }
 0xad6   :  { %v1351_v8 = vmul.f32 %v4813_v7, %v4809_v45  ;;  %v1516_v24 = vpop.permute.xlu0 %1515  ;;  %v4678_v45 = vpack.c.bf16 %v1669_v2, %v1668_v0  ;;  %v5248_v7 = vsub.s32 2, %v5005_v26 }
 0xad7   :  { %v1532_v29 = vsel %vm1531_vm4, %v1529_v25, %v1516_v24  ;;  %v1768_v24 = vld [vmem:[%s5702_s6 + $0x18] sm:$0xff] }
 0xad8   :  { %4438 = vmatmul.mubr.msk.f32.vlgmr.msra.gmra.mrb[14].mxu0 %vm189_vm2, %v1351_v8  ;;  %v5251_v8 = vsub.s32 3, %v5005_v26  ;;  %v4686_v25 = vpack.c.bf16 %v1768_v24, %v1767_v23 }
 0xad9   :  { %v4815_v9 = vpop.eup %4814  ;;  %4669 = vmatpush3.bf16.msra.mxu0 %v4666_v12 }
 0xada   :  { %v1352_v10 = vmul.f32 %v4815_v9, %v4811_v63  ;;  %4671 = vmatprep.subr.bf16.mxu0 %v4670_v15  ;;  %v1657_v9 = vrot.slane %v5035_v42, %v5248_v7  ;;  %v1663_v11 = vrot.slane %v5035_v42, %v5251_v8 }
 0xadc   :  { %4443 = vmatmul.mubr.msk.f32.vlgmr.msra.gmra.mrb[16].mxu1 %vm189_vm2, %v1352_v10 }
 0xadd   :  { %4673 = vmatpush3.bf16.msra.mxu0 %v4670_v15 }
 0xbab   :  { %v1425_v16 = vpop.f32.mrb[14].mxu0 }
 0xbac   :  { %1523 = vrot.lane.b32.xlu0 %v1425_v16, %s5710_s29  ;;  %v4439_v17 = vpop.f32.mrb[15].mxu0 }
 0xbaf   :  { %v1501_v19 = vpop.f32.mrb[16].mxu1 }
 0xbb0   :  { %1525 = vrot.lane.b32.xlu1 %v1501_v19, %s5710_s29  ;;  %v4444_v21 = vpop.f32.mrb[17].mxu1  ;;  %v1765_v19 = vld [vmem:[%s5702_s6] sm:$0xff] }
 0xbb1   :  { %v1766_v21 = vld [vmem:[%s5702_s6 + $0x8] sm:$0xff] }
 0xbb2   :  { %v4682_v22 = vpack.c.bf16 %v1766_v21, %v1765_v19 }
 0xbb4   :  { %4683 = vmatprep.subr.bf16.mxu0 %v4682_v22 }
 0xc1e   :  { %v1524_v31 = vpop.permute.xlu0 %1523 }
 0xc1f   :  { %v1535_v32 = vsel %vm1534_vm3, %v1532_v29, %v1524_v31  ;;  %v1770_v29 = vld [vmem:[%s5702_s6 + $0x28] sm:$0xff] }
 0xc20   :  { %4453 = vmatprep.mubr.msk.f32.mxu0 %vm42_vm0, %v1535_v32  ;;  %v4690_v31 = vpack.c.bf16 %v1770_v29, %v1769_v27  ;;  %v1771_v32 = vld [vmem:[%s5702_s6 + $0x30] sm:$0xff]  ;;  %v5319_v27 = vsub.s32 7, %v5005_v26 }
 0xc22   :  { %v1526_v35 = vpop.permute.xlu1 %1525 }
 0xc23   :  { %v1536_v36 = vsel %vm1534_vm3, %v1533_v34, %v1526_v35  ;;  %v4694_v34 = vpack.c.bf16 %v1772_v33, %v1771_v32  ;;  %v5285_v35 = vsub.s32 4, %v5005_v26 }
 0xc24   :  { %4454 = vmatmul.mubr.msk.f32.vlgmr.msra.gmra.mrb[16].mxu0 %vm42_vm0, %v1536_v36 }
 0xc25   :  { %4685 = vmatpush3.bf16.msra.mxu0 %v4682_v22  ;;  %v1673_v36 = vrot.slane %v5035_v42, %v5285_v35 }
 0xc26   :  { %4687 = vmatprep.subr.bf16.mxu0 %v4686_v25 }
 0xc29   :  { %4689 = vmatpush3.bf16.msra.mxu0 %v4686_v25  ;;  %v5316_v25 = vsub.s32 6, %v5005_v26 }
 0xc2a   :  { %4691 = vmatprep.subr.bf16.mxu0 %v4690_v31 }
 0xc2b   :  { %v1890_v29 = vrot.slane %v5035_v42, %v5316_v25 }
 0xc2d   :  { %4693 = vmatpush3.bf16.msra.mxu0 %v4690_v31 }
 0xc2e   :  { %4695 = vmatprep.subr.bf16.mxu0 %v4694_v34 }
 0xc31   :  { %4697 = vmatpush3.bf16.msra.mxu0 %v4694_v34 }
 0xc32   :  { %4507 = vmatprep.subr.mxu0 %v4905_v41 }
 0xcf7   :  { %v4455_v37 = vpop.f32.mrb[16].mxu0 }
 0xcf8   :  { %v1623_v39 = vadd.f32 %v4455_v37, %v1544_v18  ;;  %v1617_v43 = vpop.f32.mrb[17].mxu0 }
 0xcf9   :  { %v1618_v44 = vadd.f32 %v1617_v43, %v1544_v18 }
 0xcfa   :  { %v1627_v46 = vadd.f32 %v1623_v39, %v5022_v40 }
 0xcfb   :  { %v1626_v48 = vadd.f32 %v1618_v44, %v5018_v38  ;;  %v1666_v38 = vld [vmem:[%s5701_s5] sm:$0xff] }
 0xcfc   :  { %v1631_v20 = vsel %vm42_vm0, %v1627_v46, 0.0  ;;  %v4674_v62 = vpack.c.bf16 %v1667_v61, %v1666_v38 }
 0xcfd   :  { %1632 = vadd.xlane.f32.xlu1 %v1631_v20  ;;  %v1628_v49 = vsel %vm42_vm0, %v1626_v48, 0.0 }
 0xcfe   :  { %1629 = vadd.xlane.f32.xlu0 %v1628_v49  ;;  %4675 = vmatprep.subr.bf16.mxu1 %v4674_v62 }
 0xcff   :  { %4677 = vmatpush3.bf16.msra.mxu1 %v4674_v62 }
 0xd00   :  { %4679 = vmatprep.subr.bf16.mxu1 %v4678_v45 }
 0xd03   :  { %4681 = vmatpush3.bf16.msra.mxu1 %v4678_v45 }
 0xd8a   :  { %v1633_v51 = vpop.xlane.xlu1 %1632 }
 0xd8b   :  { %v1635_v52 = vmul.f32 0.03125, %v1633_v51  ;;  %v1630_v53 = vpop.xlane.xlu0 %1629 }
 0xd8c   :  { %v1634_v55 = vmul.f32 0.03125, %v1630_v53 }
 0xd8d   :  { %v1637_v56 = vsub.f32 %v1627_v46, %v1635_v52 }
 0xd8e   :  { %v1636_v57 = vsub.f32 %v1626_v48, %v1634_v55 }
 0xd8f   :  { %v1639_v60 = vmul.f32 %v1637_v56, %v1637_v56 }
 0xd90   :  { %v1638_v58 = vmul.f32 %v1636_v57, %v1636_v57 }
 0xd91   :  { %v1643_v40 = vsel %vm42_vm0, %v1639_v60, 0.0 }
 0xd92   :  { %v1640_v59 = vsel %vm42_vm0, %v1638_v58, 0.0 }
 0xd93   :  { %1641 = vadd.xlane.f32.xlu0 %v1640_v59 }
 0xd97   :  { %1644 = vadd.xlane.f32.xlu0 %v1643_v40 }
 0xe20   :  { %v1642_v3 = vpop.xlane.xlu0 %1641 }
 0xe21   :  { %v1646_v63 = vmul.f32 0.03125, %v1642_v3 }
 0xe23   :  { %v1648_v1 = vadd.f32 1e-12, %v1646_v63 }
 0xe24   :  { %v1645_v4 = vpop.xlane.xlu0 %1644 }
 0xe25   :  { %4816 = vrsqrt.f32 %v1648_v1  ;;  %v1647_v5 = vmul.f32 0.03125, %v1645_v4 }
 0xe27   :  { %v1649_v6 = vadd.f32 1e-12, %v1647_v5 }
 0xe29   :  { %4818 = vrsqrt.f32 %v1649_v6 }
 0xe2f   :  { %v4817_v10 = vpop.eup %4816 }
 0xe30   :  { %v1652_v47 = vmul.f32 %v4817_v10, %v1636_v57  ;;  %v5294_v57 = vsub.s32 5, %v5005_v26  ;;  %v5338_v26 = vld [vmem:[%s5703_s7 + $0x8] sm:$0xff] }
 0xe32   :  { %v1658_v12 = vmul.f32 %v1657_v9, %v1652_v47  ;;  %v1776_v58 = vrot.slane %v5035_v42, %v5294_v57 }
 0xe33   :  { %v4819_v13 = vpop.eup %4818 }
 0xe34   :  { %v1653_v14 = vmul.f32 %v4819_v13, %v1637_v56  ;;  %v1664_v15 = vadd.f32 %v1663_v11, %v1658_v12  ;;  %v4157_v12 = vld [vmem:[%s5699_s3 + $0x28] sm:$0xff] }
 0xe36   :  { %v1659_v16 = vmul.f32 %v1657_v9, %v1653_v14  ;;  %4464 = vmatprep.mubr.msk.f32.mxu1 %vm42_vm0, %v1664_v15  ;;  %v4158_v14 = vld [vmem:[%s5699_s3 + $0x30] sm:$0xff] }
 0xe38   :  { %v1665_v17 = vadd.f32 %v1663_v11, %v1659_v16  ;;  %v4156_v11 = vld [vmem:[%s5699_s3 + $0x20] sm:$0xff] }
 0xe39   :  { %v4698_v13 = vpack.c.bf16 %v4157_v12, %v4156_v11 }
 0xe3a   :  { %4465 = vmatmul.mubr.msk.f32.vlgmr.msra.gmra.mrb[18].mxu1 %vm42_vm0, %v1665_v17 }
 0xe3b   :  { %4699 = vmatprep.subr.bf16.mxu1 %v4698_v13 }
 0xe3c   :  { %4701 = vmatpush3.bf16.msra.mxu1 %v4698_v13 }
 0xf0d   :  { %v4466_v18 = vpop.f32.mrb[18].mxu1 }
 0xf0e   :  { %v1752_v37 = vadd.f32 %v4466_v18, %v1673_v36  ;;  %v1746_v39 = vpop.f32.mrb[19].mxu1 }
 0xf0f   :  { %v1747_v43 = vadd.f32 %v1746_v39, %v1673_v36  ;;  %v1896_v36 = vrot.slane %v5035_v42, %v5319_v27  ;;  %v1909_v42 = vrot.slane %v5338_v26, %v5008_v28 }
 0xf10   :  { %v1758_v44 = vmul.f32 0.70710677, %v1752_v37  ;;  %v1756_v53 = vmul.f32 0.5, %v1752_v37 }
 0xf11   :  { %v1757_v46 = vmul.f32 0.70710677, %v1747_v43  ;;  %v1755_v51 = vmul.f32 0.5, %v1747_v43 }
 0xf12   :  { %4820 = verf.f32 %v1758_v44 }
 0xf13   :  { %4822 = verf.f32 %v1757_v46 }
 0xf1c   :  { %v4821_v48 = vpop.eup %4820 }
 0xf1d   :  { %v4823_v20 = vpop.eup %4822  ;;  %v1762_v49 = vadd.f32 1.0, %v4821_v48 }
 0xf1e   :  { %v1761_v52 = vadd.f32 1.0, %v4823_v20 }
 0xf1f   :  { %v1764_v56 = vmul.f32 %v1762_v49, %v1756_v53 }
 0xf20   :  { %v1763_v55 = vmul.f32 %v1761_v52, %v1755_v51 }
 0xf22   :  { %4483 = vmatprep.mubr.msk.f32.mxu0 %vm1777_vm5, %v1763_v55 }
 0xf23   :  { %4484 = vmatmul.mubr.msk.f32.vlgmr.msra.gmra.mrb[18].mxu0 %vm1777_vm5, %v1764_v56 }
 0xf24   :  { %4509 = vmatprep.mubr.msk.f32.mxu0 %vm4906_vm1, %v4905_v41 }
 0xff6   :  { %v4485_v59 = vpop.f32.mrb[18].mxu0 }
 0xff7   :  { %v1856_v60 = vadd.f32 %v4485_v59, %v1776_v58  ;;  %v1850_v40 = vpop.f32.mrb[19].mxu0 }
 0xff8   :  { %v1851_v38 = vadd.f32 %v1850_v40, %v1776_v58 }
 0xff9   :  { %v1860_v61 = vadd.f32 %v1856_v60, %v1665_v17 }
 0xffa   :  { %v1859_v62 = vadd.f32 %v1851_v38, %v1664_v15  ;;  %v4159_v15 = vld [vmem:[%s5699_s3 + $0x38] sm:$0xff] }
 0xffb   :  { %v1864_v0 = vsel %vm42_vm0, %v1860_v61, 0.0  ;;  %v4702_v16 = vpack.c.bf16 %v4159_v15, %v4158_v14 }
 0xffc   :  { %1865 = vadd.xlane.f32.xlu1 %v1864_v0  ;;  %v1861_v2 = vsel %vm42_vm0, %v1859_v62, 0.0 }
 0xffd   :  { %1862 = vadd.xlane.f32.xlu0 %v1861_v2  ;;  %4703 = vmatprep.subr.bf16.mxu1 %v4702_v16 }
 0xffe   :  { %4705 = vmatpush3.bf16.msra.mxu1 %v4702_v16 }
 0xfff   :  { %4497 = vmatprep.subr.mxu1 %v4905_v41 }
0x1089   :  { %v1866_v45 = vpop.xlane.xlu1 %1865 }
0x108a   :  { %v1868_v3 = vmul.f32 0.03125, %v1866_v45  ;;  %v1863_v63 = vpop.xlane.xlu0 %1862 }
0x108b   :  { %v1867_v1 = vmul.f32 0.03125, %v1863_v63 }
0x108c   :  { %v1870_v4 = vsub.f32 %v1860_v61, %v1868_v3 }
0x108d   :  { %v1869_v5 = vsub.f32 %v1859_v62, %v1867_v1 }
0x108e   :  { %v1872_v6 = vmul.f32 %v1870_v4, %v1870_v4 }
0x108f   :  { %v1871_v9 = vmul.f32 %v1869_v5, %v1869_v5 }
0x1090   :  { %v1876_v10 = vsel %vm42_vm0, %v1872_v6, 0.0 }
0x1091   :  { %1877 = vadd.xlane.f32.xlu1 %v1876_v10  ;;  %v1873_v47 = vsel %vm42_vm0, %v1871_v9, 0.0 }
0x1092   :  { %1874 = vadd.xlane.f32.xlu0 %v1873_v47 }
0x111e   :  { %v1878_v17 = vpop.xlane.xlu1 %1877 }
0x111f   :  { %v1880_v19 = vmul.f32 0.03125, %v1878_v17  ;;  %v1875_v21 = vpop.xlane.xlu0 %1874 }
0x1120   :  { %v1879_v22 = vmul.f32 0.03125, %v1875_v21  ;;  %v5405_v21 = vld [vmem:[%s5697_s1] ss:$0 sm:$0xff] }
0x1121   :  { %v1882_v23 = vadd.f32 1e-12, %v1880_v19 }
0x1122   :  { %v1881_v24 = vadd.f32 1e-12, %v1879_v22 }
0x1123   :  { %4824 = vrsqrt.f32 %v1882_v23 }
0x1124   :  { %4826 = vrsqrt.f32 %v1881_v24 }
0x112d   :  { %v4825_v31 = vpop.eup %4824 }
0x112e   :  { %v4827_v32 = vpop.eup %4826  ;;  %v1886_v33 = vmul.f32 %v4825_v31, %v1870_v4 }
0x112f   :  { %v1885_v34 = vmul.f32 %v4827_v32, %v1869_v5  ;;  %v5412_v32 = vld [vmem:[%s5697_s1 + $0x1] ss:$0 sm:$0xff]  ;;  %s5712_s1 = smov 16  }
0x1130   :  { %v1892_v18 = vmul.f32 %v1890_v29, %v1886_v33 }
0x1131   :  { %v1891_v37 = vmul.f32 %v1890_v29, %v1885_v34 }
0x1132   :  { %v5327_v43 = vadd.f32 %v1896_v36, %v1892_v18 }
0x1133   :  { %v5325_v39 = vadd.f32 %v1896_v36, %v1891_v37 }
0x1135   :  { %4494 = vmatprep.mubr.msk.f32.mxu1 %vm42_vm0, %v5325_v39 }
0x1136   :  { %4495 = vmatmul.mubr.msk.f32.vlgmr.msra.gmra.mrb[20].mxu1 %vm42_vm0, %v5327_v43 }
0x1137   :  { %4499 = vmatprep.mubr.msk.f32.mxu1 %vm4906_vm1, %v4905_v41 }
0x1209   :  { %v4496_v44 = vpop.f32.mrb[20].mxu1 }
0x120a   :  { %v5342_v46 = vadd.f32 %v4496_v44, %v1909_v42  ;;  %v1982_v48 = vpop.f32.mrb[21].mxu1 }
0x120b   :  { %v5344_v20 = vadd.f32 %v1982_v48, %v1909_v42 }
0x120c   :  { %2069 = vrot.lane.b32.xlu1 %v5342_v46, %s4907_s13 }
0x120d   :  { %1992 = vrot.lane.b32.xlu0 %v5344_v20, %s4907_s13 }
0x127e   :  { %v2070_v51 = vpop.permute.xlu1 %2069 }
0x127f   :  { %v1993_v49 = vpop.permute.xlu0 %1992 }
0x1280   :  { %4498 = vmatpush3.xpose.msk.msra.mxu1 %vm189_vm2, %v1993_v49 }
0x1281   :  { %4502 = vmatprep.subr.mxu1 %v4905_v41 }
0x1283   :  { %4500 = vmatmul.mubr.msk.f32.vlgmr.msra.gmra.mrb[22].mxu1 %vm189_vm2, %v5344_v20 }
0x1284   :  { %4503 = vmatpush3.xpose.msk.msra.mxu1 %vm189_vm2, %v2070_v51  ;;  %4504 = vmatprep.mubr.msk.f32.mxu1 %vm4906_vm1, %v4905_v41 }
0x1285   :  { %4512 = vmatprep.subr.mxu1 %v4905_v41 }
0x1287   :  { %4505 = vmatmul.mubr.msk.f32.vlgmr.msra.gmra.mrb[24].mxu1 %vm189_vm2, %v5342_v46 }
0x1288   :  { %4514 = vmatprep.mubr.msk.f32.mxu1 %vm4906_vm1, %v4905_v41 }
0x1356   :  { %v2064_v28 = vpop.f32.mrb[22].mxu1 }
0x1357   :  { %v2065_v52 = vadd.f32 %v5062_v50, %v2064_v28  ;;  %v4501_v53 = vpop.f32.mrb[23].mxu1 }
0x1359   :  { %v2145_v55 = vsel %vm189_vm2, %v2065_v52, -inf }
0x135a   :  { %2146 = vmax.xlane.f32.xlu1 %v2145_v55  ;;  %v2141_v56 = vpop.f32.mrb[24].mxu1 }
0x135b   :  { %v2142_v58 = vadd.f32 %v5068_v54, %v2141_v56  ;;  %v4506_v59 = vpop.f32.mrb[25].mxu1 }
0x135d   :  { %v2148_v60 = vsel %vm189_vm2, %v2142_v58, -inf }
0x135e   :  { %2149 = vmax.xlane.f32.xlu0 %v2148_v60 }
0x136b   :  { %2243 = vrot.lane.b32.xlu1 %v5342_v46, %s4908_s18 }
0x136f   :  { %2321 = vrot.lane.b32.xlu1 %v5344_v20, %s4909_s19 }
0x1373   :  { %2399 = vrot.lane.b32.xlu1 %v5342_v46, %s4909_s19 }
0x1374   :  { %2167 = vrot.lane.b32.xlu0 %v5344_v20, %s4908_s18 }
0x13e7   :  { %v2147_v50 = vpop.xlane.xlu1 %2146 }
0x13e8   :  { %v2151_v40 = vsub.f32 %v2065_v52, %v2147_v50 }
0x13ea   :  { %v2153_v38 = vmul.f32 1.442695, %v2151_v40 }
0x13eb   :  { %v2244_v54 = vpop.permute.xlu1 %2243  ;;  %v2150_v61 = vpop.xlane.xlu0 %2149 }
0x13ec   :  { %4828 = vpow2.f32 %v2153_v38  ;;  %v2152_v62 = vsub.f32 %v2142_v58, %v2150_v61  ;;  %4513 = vmatpush3.msra.mxu1 %v2244_v54 }
0x13ed   :  { %4522 = vmatprep.subr.mxu1 %v4905_v41 }
0x13ee   :  { %v2155_v0 = vmul.f32 1.442695, %v2152_v62 }
0x13ef   :  { %v2168_v2 = vpop.permute.xlu0 %2167  ;;  %v2322_v4 = vpop.permute.xlu1 %2321 }
0x13f0   :  { %4830 = vpow2.f32 %v2155_v0  ;;  %4508 = vmatpush3.msra.mxu0 %v2168_v2 }
0x13f1   :  { %4517 = vmatprep.subr.mxu0 %v4905_v41 }
0x13f3   :  { %v2400_v5 = vpop.permute.xlu1 %2399 }
0x13f6   :  { %v4829_v45 = vpop.eup %4828 }
0x13f7   :  { %v2157_v3 = vsel %vm189_vm2, %v4829_v45, 0.0 }
0x13f8   :  { %2158 = vadd.xlane.f32.xlu0 %v2157_v3 }
0x13fa   :  { %v4831_v63 = vpop.eup %4830 }
0x13fb   :  { %v2160_v1 = vsel %vm189_vm2, %v4831_v63, 0.0 }
0x13fc   :  { %2161 = vadd.xlane.f32.xlu1 %v2160_v1 }
0x140d   :  { %2397 = vrot.lane.b32.xlu1 %v5342_v46, %s4910_s20 }
0x140e   :  { %2319 = vrot.lane.b32.xlu0 %v5344_v20, %s4910_s20 }
0x1485   :  { %v2159_v6 = vpop.xlane.xlu0 %2158 }
0x1486   :  { %4832 = vrcp.f32 %v2159_v6 }
0x1489   :  { %v2162_v9 = vpop.xlane.xlu1 %2161  ;;  %v2320_v13 = vpop.permute.xlu0 %2319 }
0x148a   :  { %4834 = vrcp.f32 %v2162_v9 }
0x148d   :  { %v2398_v14 = vpop.permute.xlu1 %2397 }
0x1490   :  { %v4833_v10 = vpop.eup %4832 }
0x1491   :  { %v2165_v47 = vmul.f32 %v4833_v10, %v4829_v45 }
0x1493   :  { %4510 = vmatmul.mubr.msk.f32.vlgmr.msra.gmra.mrb[20].mxu0 %vm189_vm2, %v2165_v47 }
0x1494   :  { %v4835_v11 = vpop.eup %4834  ;;  %4518 = vmatpush3.xpose.msk.msra.mxu0 %vm189_vm2, %v2322_v4  ;;  %4519 = vmatprep.mubr.msk.f32.mxu0 %vm4906_vm1, %v4905_v41 }
0x1495   :  { %v2166_v12 = vmul.f32 %v4835_v11, %v4831_v63  ;;  %4527 = vmatprep.subr.mxu0 %v4905_v41 }
0x1497   :  { %4515 = vmatmul.mubr.msk.f32.vlgmr.msra.gmra.mrb[26].mxu1 %vm189_vm2, %v2166_v12  ;;  %4520 = vmatmul.mubr.msk.f32.vlgmr.msra.gmra.mrb[22].mxu0 %vm189_vm2, %v2320_v13 }
0x1498   :  { %4523 = vmatpush3.xpose.msk.msra.mxu1 %vm189_vm2, %v2400_v5  ;;  %4524 = vmatprep.mubr.msk.f32.mxu1 %vm4906_vm1, %v4905_v41 }
0x1499   :  { %4532 = vmatprep.subr.mxu1 %v4905_v41  ;;  %4529 = vmatprep.mubr.msk.f32.mxu0 %vm4906_vm1, %v4905_v41 }
0x149b   :  { %4525 = vmatmul.mubr.msk.f32.vlgmr.msra.gmra.mrb[28].mxu1 %vm189_vm2, %v2398_v14 }
0x149c   :  { %4534 = vmatprep.mubr.msk.f32.mxu1 %vm4906_vm1, %v4905_v41 }
0x1566   :  { %v5398_v15 = vpop.f32.mrb[20].mxu0 }
0x1567   :  { %v4511_v16 = vpop.f32.mrb[21].mxu0 }
0x156a   :  { %v5400_v17 = vpop.f32.mrb[26].mxu1  ;;  %v2393_v19 = vpop.f32.mrb[22].mxu0 }
0x156b   :  { %v2394_v22 = vadd.f32 %v5405_v21, %v2393_v19  ;;  %v4516_v23 = vpop.f32.mrb[27].mxu1  ;;  %v4521_v24 = vpop.f32.mrb[23].mxu0 }
0x156d   :  { %v2475_v29 = vsel %vm189_vm2, %v2394_v22, -inf }
0x156e   :  { %2476 = vmax.xlane.f32.xlu0 %v2475_v29  ;;  %v2471_v31 = vpop.f32.mrb[28].mxu1 }
0x156f   :  { %v2472_v33 = vadd.f32 %v5412_v32, %v2471_v31  ;;  %v4526_v34 = vpop.f32.mrb[29].mxu1 }
0x1571   :  { %v2478_v36 = vsel %vm189_vm2, %v2472_v33, -inf }
0x1572   :  { %2479 = vmax.xlane.f32.xlu1 %v2478_v36 }
0x1583   :  { %2573 = vrot.lane.b32.xlu1 %v5342_v46, %s4911_s0 }
0x1584   :  { %2497 = vrot.lane.b32.xlu0 %v5344_v20, %s4911_s0 }
0x1587   :  { %2651 = vrot.lane.b32.xlu1 %v5344_v20, %s4912_s21 }
0x158b   :  { %2729 = vrot.lane.b32.xlu1 %v5342_v46, %s4912_s21 }
0x158f   :  { %2727 = vrot.lane.b32.xlu1 %v5342_v46, %s4913_s22 }
0x15fb   :  { %v2477_v18 = vpop.xlane.xlu0 %2476 }
0x15fc   :  { %v2481_v37 = vsub.f32 %v2394_v22, %v2477_v18 }
0x15fe   :  { %v2483_v42 = vmul.f32 1.442695, %v2481_v37 }
0x15ff   :  { %v2498_v44 = vpop.permute.xlu0 %2497  ;;  %v2480_v48 = vpop.xlane.xlu1 %2479 }
0x1600   :  { %4836 = vpow2.f32 %v2483_v42  ;;  %v2482_v49 = vsub.f32 %v2472_v33, %v2480_v48  ;;  %4528 = vmatpush3.msra.mxu0 %v2498_v44 }
0x1601   :  { %4537 = vmatprep.subr.mxu0 %v4905_v41 }
0x1602   :  { %v2485_v51 = vmul.f32 1.442695, %v2482_v49 }
0x1603   :  { %v2574_v28 = vpop.permute.xlu1 %2573 }
0x1604   :  { %4838 = vpow2.f32 %v2485_v51  ;;  %4533 = vmatpush3.msra.mxu1 %v2574_v28 }
0x1605   :  { %4542 = vmatprep.subr.mxu1 %v4905_v41 }
0x1607   :  { %v2652_v60 = vpop.permute.xlu1 %2651 }
0x160a   :  { %v4837_v52 = vpop.eup %4836 }
0x160b   :  { %v2487_v53 = vsel %vm189_vm2, %v4837_v52, 0.0  ;;  %v2730_v54 = vpop.permute.xlu1 %2729 }
0x160c   :  { %2488 = vadd.xlane.f32.xlu0 %v2487_v53 }
0x160e   :  { %v4839_v55 = vpop.eup %4838 }
0x160f   :  { %v2490_v56 = vsel %vm189_vm2, %v4839_v55, 0.0  ;;  %v2728_v0 = vpop.permute.xlu1 %2727 }
0x1610   :  { %2491 = vadd.xlane.f32.xlu0 %v2490_v56 }
0x1626   :  { %2649 = vrot.lane.b32.xlu0 %v5344_v20, %s4913_s22 }
0x1699   :  { %v2489_v58 = vpop.xlane.xlu0 %2488 }
0x169a   :  { %4840 = vrcp.f32 %v2489_v58 }
0x169d   :  { %v2492_v59 = vpop.xlane.xlu0 %2491 }
0x169e   :  { %4842 = vrcp.f32 %v2492_v59 }
0x16a1   :  { %v2650_v62 = vpop.permute.xlu0 %2649 }
0x16a4   :  { %v4841_v50 = vpop.eup %4840 }
0x16a5   :  { %v2495_v40 = vmul.f32 %v4841_v50, %v4837_v52 }
0x16a7   :  { %4530 = vmatmul.mubr.msk.f32.vlgmr.msra.gmra.mrb[24].mxu0 %vm189_vm2, %v2495_v40 }
0x16a8   :  { %v4843_v38 = vpop.eup %4842  ;;  %4538 = vmatpush3.xpose.msk.msra.mxu0 %vm189_vm2, %v2652_v60  ;;  %4539 = vmatprep.mubr.msk.f32.mxu0 %vm4906_vm1, %v4905_v41 }
0x16a9   :  { %v2496_v61 = vmul.f32 %v4843_v38, %v4839_v55  ;;  %4547 = vmatprep.subr.mxu0 %v4905_v41 }
0x16ab   :  { %4535 = vmatmul.mubr.msk.f32.vlgmr.msra.gmra.mrb[30].mxu1 %vm189_vm2, %v2496_v61  ;;  %4540 = vmatmul.mubr.msk.f32.vlgmr.msra.gmra.mrb[26].mxu0 %vm189_vm2, %v2650_v62 }
0x16ac   :  { %4543 = vmatpush3.xpose.msk.msra.mxu1 %vm189_vm2, %v2730_v54  ;;  %4544 = vmatprep.mubr.msk.f32.mxu1 %vm4906_vm1, %v4905_v41 }
0x16ad   :  { %4552 = vmatprep.subr.mxu1 %v4905_v41  ;;  %4549 = vmatprep.mubr.msk.f32.mxu0 %vm4906_vm1, %v4905_v41 }
0x16af   :  { %4545 = vmatmul.mubr.msk.f32.vlgmr.msra.gmra.mrb[32].mxu1 %vm189_vm2, %v2728_v0 }
0x16b0   :  { %4554 = vmatprep.mubr.msk.f32.mxu1 %vm4906_vm1, %v4905_v41 }
0x177a   :  { %v5448_v2 = vpop.f32.mrb[24].mxu0 }
0x177b   :  { %v4531_v45 = vpop.f32.mrb[25].mxu0 }
0x177e   :  { %v5450_v3 = vpop.f32.mrb[30].mxu1  ;;  %v2723_v63 = vpop.f32.mrb[26].mxu0 }
0x177f   :  { %v2724_v1 = vadd.f32 %v5405_v21, %v2723_v63  ;;  %v4536_v4 = vpop.f32.mrb[31].mxu1  ;;  %v4541_v5 = vpop.f32.mrb[27].mxu0 }
0x1781   :  { %v2805_v6 = vsel %vm189_vm2, %v2724_v1, -inf }
0x1782   :  { %2806 = vmax.xlane.f32.xlu0 %v2805_v6  ;;  %v2801_v9 = vpop.f32.mrb[32].mxu1 }
0x1783   :  { %v2802_v10 = vadd.f32 %v5412_v32, %v2801_v9  ;;  %v4546_v47 = vpop.f32.mrb[33].mxu1 }
0x1785   :  { %v2808_v11 = vsel %vm189_vm2, %v2802_v10, -inf }
0x1786   :  { %2809 = vmax.xlane.f32.xlu1 %v2808_v11 }
0x1797   :  { %2903 = vrot.lane.b32.xlu1 %v5342_v46, %s4914_s23 }
0x1798   :  { %2827 = vrot.lane.b32.xlu0 %v5344_v20, %s4914_s23 }
0x179b   :  { %2981 = vrot.lane.b32.xlu1 %v5344_v20, %s4915_s24 }
0x179f   :  { %3059 = vrot.lane.b32.xlu1 %v5342_v46, %s4915_s24 }
0x17a3   :  { %3057 = vrot.lane.b32.xlu1 %v5342_v46, %s4916_s25 }
0x180f   :  { %v2807_v12 = vpop.xlane.xlu0 %2806 }
0x1810   :  { %v2811_v13 = vsub.f32 %v2724_v1, %v2807_v12 }
0x1812   :  { %v2813_v14 = vmul.f32 1.442695, %v2811_v13 }
0x1813   :  { %v2828_v16 = vpop.permute.xlu0 %2827  ;;  %v2810_v19 = vpop.xlane.xlu1 %2809 }
0x1814   :  { %4844 = vpow2.f32 %v2813_v14  ;;  %v2812_v22 = vsub.f32 %v2802_v10, %v2810_v19  ;;  %4548 = vmatpush3.msra.mxu0 %v2828_v16  ;;  %v4187_v14 = vld [vmem:[%s5700_s4 + $0x28] sm:$0xff]  ;;  %v4188_v19 = vld [vmem:[%s5700_s4 + $0x30] sm:$0xff] }
0x1815   :  { %4557 = vmatprep.subr.mxu0 %v4905_v41 }
0x1816   :  { %v2815_v23 = vmul.f32 1.442695, %v2812_v22  ;;  %v4189_v22 = vld [vmem:[%s5700_s4 + $0x38] sm:$0xff] }
0x1817   :  { %v2904_v24 = vpop.permute.xlu1 %2903 }
0x1818   :  { %4846 = vpow2.f32 %v2815_v23  ;;  %4553 = vmatpush3.msra.mxu1 %v2904_v24  ;;  %v4710_v23 = vpack.c.bf16 %v4189_v22, %v4188_v19 }
0x1819   :  { %4562 = vmatprep.subr.mxu1 %v4905_v41 }
0x181b   :  { %v2982_v37 = vpop.permute.xlu1 %2981 }
0x181e   :  { %v4845_v29 = vpop.eup %4844 }
0x181f   :  { %v2817_v31 = vsel %vm189_vm2, %v4845_v29, 0.0  ;;  %v3060_v49 = vpop.permute.xlu1 %3059 }
0x1820   :  { %2818 = vadd.xlane.f32.xlu0 %v2817_v31 }
0x1822   :  { %v4847_v33 = vpop.eup %4846 }
0x1823   :  { %v2820_v34 = vsel %vm189_vm2, %v4847_v33, 0.0  ;;  %v3058_v52 = vpop.permute.xlu1 %3057 }
0x1824   :  { %2821 = vadd.xlane.f32.xlu0 %v2820_v34 }
0x183a   :  { %2979 = vrot.lane.b32.xlu0 %v5344_v20, %s4916_s25 }
0x18ad   :  { %v2819_v36 = vpop.xlane.xlu0 %2818 }
0x18ae   :  { %4848 = vrcp.f32 %v2819_v36 }
0x18b1   :  { %v2822_v18 = vpop.xlane.xlu0 %2821 }
0x18b2   :  { %4850 = vrcp.f32 %v2822_v18 }
0x18b5   :  { %v2980_v28 = vpop.permute.xlu0 %2979 }
0x18b8   :  { %v4849_v42 = vpop.eup %4848 }
0x18b9   :  { %v2825_v44 = vmul.f32 %v4849_v42, %v4845_v29 }
0x18bb   :  { %4550 = vmatmul.mubr.msk.f32.vlgmr.msra.gmra.mrb[28].mxu0 %vm189_vm2, %v2825_v44 }
0x18bc   :  { %v4851_v48 = vpop.eup %4850  ;;  %4558 = vmatpush3.xpose.msk.msra.mxu0 %vm189_vm2, %v2982_v37  ;;  %4559 = vmatprep.mubr.msk.f32.mxu0 %vm4906_vm1, %v4905_v41 }
0x18bd   :  { %v2826_v51 = vmul.f32 %v4851_v48, %v4847_v33  ;;  %4567 = vmatprep.subr.mxu0 %v4905_v41 }
0x18bf   :  { %4555 = vmatmul.mubr.msk.f32.vlgmr.msra.gmra.mrb[34].mxu1 %vm189_vm2, %v2826_v51  ;;  %4560 = vmatmul.mubr.msk.f32.vlgmr.msra.gmra.mrb[30].mxu0 %vm189_vm2, %v2980_v28 }
0x18c0   :  { %4563 = vmatpush3.xpose.msk.msra.mxu1 %vm189_vm2, %v3060_v49  ;;  %4564 = vmatprep.mubr.msk.f32.mxu1 %vm4906_vm1, %v4905_v41 }
0x18c1   :  { %4572 = vmatprep.subr.mxu1 %v4905_v41  ;;  %4569 = vmatprep.mubr.msk.f32.mxu0 %vm4906_vm1, %v4905_v41 }
0x18c3   :  { %4565 = vmatmul.mubr.msk.f32.vlgmr.msra.gmra.mrb[36].mxu1 %vm189_vm2, %v3058_v52 }
0x18c4   :  { %4574 = vmatprep.mubr.msk.f32.mxu1 %vm4906_vm1, %v4905_v41 }
0x198e   :  { %v2899_v53 = vpop.f32.mrb[28].mxu0 }
0x198f   :  { %v4551_v55 = vpop.f32.mrb[29].mxu0 }
0x1992   :  { %v2975_v56 = vpop.f32.mrb[34].mxu1  ;;  %v3053_v58 = vpop.f32.mrb[30].mxu0 }
0x1993   :  { %v3054_v59 = vadd.f32 %v5405_v21, %v3053_v58  ;;  %v4556_v60 = vpop.f32.mrb[35].mxu1  ;;  %v4561_v50 = vpop.f32.mrb[31].mxu0 }
0x1995   :  { %v3135_v40 = vsel %vm189_vm2, %v3054_v59, -inf }
0x1996   :  { %3136 = vmax.xlane.f32.xlu0 %v3135_v40  ;;  %v3131_v38 = vpop.f32.mrb[36].mxu1 }
0x1997   :  { %v3132_v54 = vadd.f32 %v5412_v32, %v3131_v38  ;;  %v4566_v61 = vpop.f32.mrb[37].mxu1 }
0x1999   :  { %v3138_v62 = vsel %vm189_vm2, %v3132_v54, -inf }
0x199a   :  { %3139 = vmax.xlane.f32.xlu1 %v3138_v62 }
0x19ab   :  { %3233 = vrot.lane.b32.xlu1 %v5342_v46, %s4917_s26 }
0x19af   :  { %3311 = vrot.lane.b32.xlu1 %v5448_v2, %s4918_s27 }
0x19b3   :  { %3313 = vrot.lane.b32.xlu1 %v5450_v3, %s4918_s27  ;;  %s5713_s27 = smov 24  }
0x19b7   :  { %3321 = vrot.lane.b32.xlu1 %v2975_v56, %s5712_s1 }
0x1a23   :  { %v3137_v21 = vpop.xlane.xlu0 %3136 }
0x1a24   :  { %v3141_v0 = vsub.f32 %v3054_v59, %v3137_v21 }
0x1a26   :  { %v3143_v45 = vmul.f32 1.442695, %v3141_v0 }
0x1a27   :  { %v3140_v63 = vpop.xlane.xlu1 %3139 }
0x1a28   :  { %4852 = vpow2.f32 %v3143_v45  ;;  %v3142_v32 = vsub.f32 %v3132_v54, %v3140_v63 }
0x1a2a   :  { %v3145_v1 = vmul.f32 1.442695, %v3142_v32  ;;  %v4193_v32 = vld [vmem:[%s5701_s5 + $0x28] sm:$0xff] }
0x1a2b   :  { %v3234_v4 = vpop.permute.xlu1 %3233 }
0x1a2c   :  { %4854 = vpow2.f32 %v3145_v1  ;;  %4573 = vmatpush3.msra.mxu1 %v3234_v4  ;;  %v4194_v4 = vld [vmem:[%s5701_s5 + $0x30] sm:$0xff] }
0x1a2f   :  { %v3312_v34 = vpop.permute.xlu1 %3311 }
0x1a30   :  { %v3333_v37 = vsel %vm189_vm2, %v5398_v15, %v3312_v34  ;;  %v3347_v15 = vrot.slane %v5338_v26, %v5014_v30  ;;  %v4200_v34 = vld [vmem:[%s5702_s6 + $0x50] sm:$0xff] }
0x1a32   :  { %v4853_v5 = vpop.eup %4852 }
0x1a33   :  { %v3147_v46 = vsel %vm189_vm2, %v4853_v5, 0.0  ;;  %v3314_v36 = vpop.permute.xlu1 %3313 }
0x1a34   :  { %3148 = vadd.xlane.f32.xlu0 %v3147_v46  ;;  %v3334_v51 = vsel %vm189_vm2, %v5400_v17, %v3314_v36  ;;  %v4201_v36 = vld [vmem:[%s5702_s6 + $0x58] sm:$0xff] }
0x1a36   :  { %v4855_v2 = vpop.eup %4854 }
0x1a37   :  { %v3150_v6 = vsel %vm189_vm2, %v4855_v2, 0.0  ;;  %v3322_v42 = vpop.permute.xlu1 %3321 }
0x1a38   :  { %3151 = vadd.xlane.f32.xlu0 %v3150_v6  ;;  %v3336_v28 = vsel %vm1531_vm4, %v3334_v51, %v3322_v42  ;;  %v4203_v42 = vld [vmem:[%s5702_s6 + $0x68] sm:$0xff] }
0x1a4e   :  { %3157 = vrot.lane.b32.xlu0 %v5344_v20, %s4917_s26  ;;  %v4186_v20 = vld [vmem:[%s5700_s4 + $0x20] sm:$0xff] }
0x1a4f   :  { %v4706_v16 = vpack.c.bf16 %v4187_v14, %v4186_v20  ;;  %v3466_v20 = vrot.slane %v5338_v26, %v5251_v8 }
0x1a52   :  { %3319 = vrot.lane.b32.xlu0 %v2899_v53, %s5712_s1 }
0x1ac1   :  { %v3149_v3 = vpop.xlane.xlu0 %3148 }
0x1ac2   :  { %4856 = vrcp.f32 %v3149_v3 }
0x1ac5   :  { %v3152_v9 = vpop.xlane.xlu0 %3151 }
0x1ac6   :  { %4858 = vrcp.f32 %v3152_v9 }
0x1ac9   :  { %v3158_v10 = vpop.permute.xlu0 %3157 }
0x1aca   :  { %4568 = vmatpush3.msra.mxu0 %v3158_v10 }
0x1acb   :  { %4707 = vmatprep.subr.bf16.mxu0 %v4706_v16 }
0x1acc   :  { %v4857_v47 = vpop.eup %4856 }
0x1acd   :  { %v3155_v11 = vmul.f32 %v4857_v47, %v4853_v5  ;;  %v3320_v18 = vpop.permute.xlu0 %3319  ;;  %v4195_v5 = vld [vmem:[%s5701_s5 + $0x38] sm:$0xff] }
0x1ace   :  { %v3335_v44 = vsel %vm1531_vm4, %v3333_v37, %v3320_v18  ;;  %v4718_v46 = vpack.c.bf16 %v4195_v5, %v4194_v4  ;;  %v4726_v18 = vpack.c.bf16 %v4201_v36, %v4200_v34  ;;  %v4202_v37 = vld [vmem:[%s5702_s6 + $0x60] sm:$0xff] }
0x1acf   :  { %4570 = vmatmul.mubr.msk.f32.vlgmr.msra.gmra.mrb[32].mxu0 %vm189_vm2, %v3155_v11  ;;  %v3460_v11 = vrot.slane %v5338_v26, %v5248_v7 }
0x1ad0   :  { %v4859_v12 = vpop.eup %4858  ;;  %4709 = vmatpush3.bf16.msra.mxu0 %v4706_v16 }
0x1ad1   :  { %v3156_v13 = vmul.f32 %v4859_v12, %v4855_v2  ;;  %4711 = vmatprep.subr.bf16.mxu0 %v4710_v23 }
0x1ad3   :  { %4575 = vmatmul.mubr.msk.f32.vlgmr.msra.gmra.mrb[38].mxu1 %vm189_vm2, %v3156_v13 }
0x1ad4   :  { %4713 = vmatpush3.bf16.msra.mxu0 %v4710_v23 }
0x1ba2   :  { %v3229_v24 = vpop.f32.mrb[32].mxu0 }
0x1ba3   :  { %3327 = vrot.lane.b32.xlu0 %v3229_v24, %s5713_s27  ;;  %v4571_v29 = vpop.f32.mrb[33].mxu0 }
0x1ba4   :  { %v4198_v29 = vld [vmem:[%s5702_s6 + $0x40] sm:$0xff] }
0x1ba6   :  { %v3305_v31 = vpop.f32.mrb[38].mxu1 }
0x1ba7   :  { %3329 = vrot.lane.b32.xlu1 %v3305_v31, %s5713_s27  ;;  %v4576_v33 = vpop.f32.mrb[39].mxu1  ;;  %v4199_v31 = vld [vmem:[%s5702_s6 + $0x48] sm:$0xff] }
0x1ba8   :  { %v4722_v33 = vpack.c.bf16 %v4199_v31, %v4198_v29 }
0x1baa   :  { %4723 = vmatprep.subr.bf16.mxu0 %v4722_v33 }
0x1c15   :  { %v3328_v48 = vpop.permute.xlu0 %3327 }
0x1c16   :  { %v3337_v49 = vsel %vm1534_vm3, %v3335_v44, %v3328_v48  ;;  %v4730_v44 = vpack.c.bf16 %v4203_v42, %v4202_v37  ;;  %v4204_v48 = vld [vmem:[%s5702_s6 + $0x70] sm:$0xff] }
0x1c17   :  { %4585 = vmatprep.mubr.msk.f32.mxu0 %vm42_vm0, %v3337_v49  ;;  %v4205_v49 = vld [vmem:[%s5702_s6 + $0x78] sm:$0xff] }
0x1c18   :  { %v4734_v51 = vpack.c.bf16 %v4205_v49, %v4204_v48  ;;  %v3700_v48 = vrot.slane %v5338_v26, %v5319_v27 }
0x1c19   :  { %v3330_v52 = vpop.permute.xlu1 %3329 }
0x1c1a   :  { %v3338_v53 = vsel %vm1534_vm3, %v3336_v28, %v3330_v52  ;;  %v3477_v28 = vrot.slane %v5338_v26, %v5285_v35 }
0x1c1b   :  { %4586 = vmatmul.mubr.msk.f32.vlgmr.msra.gmra.mrb[34].mxu0 %vm42_vm0, %v3338_v53 }
0x1c1c   :  { %4725 = vmatpush3.bf16.msra.mxu0 %v4722_v33 }
0x1c1d   :  { %4727 = vmatprep.subr.bf16.mxu0 %v4726_v18 }
0x1c20   :  { %4729 = vmatpush3.bf16.msra.mxu0 %v4726_v18  ;;  %v3694_v18 = vrot.slane %v5338_v26, %v5316_v25 }
0x1c21   :  { %4731 = vmatprep.subr.bf16.mxu0 %v4730_v44 }
0x1c24   :  { %4733 = vmatpush3.bf16.msra.mxu0 %v4730_v44 }
0x1c25   :  { %4735 = vmatprep.subr.bf16.mxu0 %v4734_v51 }
0x1c28   :  { %4737 = vmatpush3.bf16.msra.mxu0 %v4734_v51 }
0x1cee   :  { %v4587_v55 = vpop.f32.mrb[34].mxu0 }
0x1cef   :  { %v3426_v56 = vadd.f32 %v4587_v55, %v3347_v15  ;;  %v3420_v58 = vpop.f32.mrb[35].mxu0 }
0x1cf0   :  { %v3421_v59 = vadd.f32 %v3420_v58, %v3347_v15 }
0x1cf1   :  { %v3430_v60 = vadd.f32 %v3426_v56, %v5327_v43 }
0x1cf2   :  { %v3429_v50 = vadd.f32 %v3421_v59, %v5325_v39  ;;  %v4192_v39 = vld [vmem:[%s5701_s5 + $0x20] sm:$0xff] }
0x1cf3   :  { %v3434_v17 = vsel %vm42_vm0, %v3430_v60, 0.0  ;;  %v4714_v1 = vpack.c.bf16 %v4193_v32, %v4192_v39 }
0x1cf4   :  { %3435 = vadd.xlane.f32.xlu1 %v3434_v17  ;;  %v3431_v40 = vsel %vm42_vm0, %v3429_v50, 0.0 }
0x1cf5   :  { %3432 = vadd.xlane.f32.xlu0 %v3431_v40  ;;  %4715 = vmatprep.subr.bf16.mxu1 %v4714_v1 }
0x1cf6   :  { %4717 = vmatpush3.bf16.msra.mxu1 %v4714_v1 }
0x1cf7   :  { %4719 = vmatprep.subr.bf16.mxu1 %v4718_v46 }
0x1cfa   :  { %4721 = vmatpush3.bf16.msra.mxu1 %v4718_v46 }
0x1d81   :  { %v3436_v38 = vpop.xlane.xlu1 %3435 }
0x1d82   :  { %v3438_v54 = vmul.f32 0.03125, %v3436_v38  ;;  %v3433_v61 = vpop.xlane.xlu0 %3432 }
0x1d83   :  { %v3437_v62 = vmul.f32 0.03125, %v3433_v61 }
0x1d84   :  { %v3440_v21 = vsub.f32 %v3430_v60, %v3438_v54 }
0x1d85   :  { %v3439_v30 = vsub.f32 %v3429_v50, %v3437_v62  ;;  %v3581_v62 = vrot.slane %v5338_v26, %v5294_v57  ;;  %v3797_v26 = vld [vmem:[%s5698_s2 + $0x8] sm:$0xff] }
0x1d86   :  { %v3442_v63 = vmul.f32 %v3440_v21, %v3440_v21 }
0x1d87   :  { %v3441_v0 = vmul.f32 %v3439_v30, %v3439_v30 }
0x1d88   :  { %v3446_v43 = vsel %vm42_vm0, %v3442_v63, 0.0 }
0x1d89   :  { %v3443_v45 = vsel %vm42_vm0, %v3441_v0, 0.0 }
0x1d8a   :  { %3444 = vadd.xlane.f32.xlu0 %v3443_v45 }
0x1d8e   :  { %3447 = vadd.xlane.f32.xlu0 %v3446_v43 }
0x1e17   :  { %v3445_v2 = vpop.xlane.xlu0 %3444 }
0x1e18   :  { %v3449_v6 = vmul.f32 0.03125, %v3445_v2 }
0x1e1a   :  { %v3451_v3 = vadd.f32 1e-12, %v3449_v6 }
0x1e1b   :  { %v3448_v9 = vpop.xlane.xlu0 %3447 }
0x1e1c   :  { %4860 = vrsqrt.f32 %v3451_v3  ;;  %v3450_v10 = vmul.f32 0.03125, %v3448_v9 }
0x1e1e   :  { %v3452_v47 = vadd.f32 1e-12, %v3450_v10 }
0x1e20   :  { %4862 = vrsqrt.f32 %v3452_v47  ;;  %v3708_v47 = vld [vmem:[%s5705_s9] sm:$0xff] }
0x1e26   :  { %v4861_v12 = vpop.eup %4860 }
0x1e27   :  { %v3455_v13 = vmul.f32 %v4861_v12, %v3439_v30 }
0x1e29   :  { %v3461_v14 = vmul.f32 %v3460_v11, %v3455_v13  ;;  %v3710_v13 = vld [vmem:[%s5705_s9 + $0x10] sm:$0xff] }
0x1e2a   :  { %v4863_v16 = vpop.eup %4862 }
0x1e2b   :  { %v3456_v19 = vmul.f32 %v4863_v16, %v3440_v21  ;;  %v3467_v22 = vadd.f32 %v3466_v20, %v3461_v14  ;;  %v4921_v14 = vmov 0.0|0.0  }
0x1e2c   :  { %4738 = vmatprep.subr.bf16.mxu1 %v4921_v14  ;;  %4756 = vmatprep.subr.bf16.mxu0 %v4921_v14 }
0x1e2d   :  { %v3462_v23 = vmul.f32 %v3460_v11, %v3456_v19  ;;  %4596 = vmatprep.mubr.msk.f32.mxu1 %vm42_vm0, %v3467_v22  ;;  %v3709_v11 = vld [vmem:[%s5705_s9 + $0x8] sm:$0xff]  ;;  %v3790_v19 = vld [vmem:[%s5705_s9 + $0x20] sm:$0xff] }
0x1e2e   :  { %v4739_v12 = vpack.c.bf16 %v3709_v11, %v3708_v47 }
0x1e2f   :  { %v3468_v24 = vadd.f32 %v3466_v20, %v3462_v23  ;;  %v3711_v20 = vld [vmem:[%s5705_s9 + $0x18] sm:$0xff] }
0x1e30   :  { %v4742_v16 = vpack.c.bf16 %v3711_v20, %v3710_v13  ;;  %v4025_v13 = vld [vmem:[%s5706_s10] sm:$0xff]  ;;  %v4026_v20 = vld [vmem:[%s5706_s10 + $0x8] sm:$0xff] }
0x1e31   :  { %4597 = vmatmul.mubr.msk.f32.vlgmr.msra.gmra.mrb[40].mxu1 %vm42_vm0, %v3468_v24 }
0x1e32   :  { %4626 = vmatprep.mubr.msk.f32.mxu1 %vm4906_vm1, %v4905_v41  ;;  %4740 = vmatpush3.bf16.msra.mxu1 %v4739_v12 }
0x1e33   :  { %4741 = vmatprep.subr.bf16.mxu1 %v4921_v14 }
0x1e36   :  { %4743 = vmatpush3.bf16.msra.mxu1 %v4742_v16  ;;  %v4027_v16 = vld [vmem:[%s5706_s10 + $0x10] sm:$0xff] }
0x1f04   :  { %v4598_v52 = vpop.f32.mrb[40].mxu1 }
0x1f05   :  { %v3556_v53 = vadd.f32 %v4598_v52, %v3477_v28  ;;  %v3550_v15 = vpop.f32.mrb[41].mxu1 }
0x1f06   :  { %v3551_v55 = vadd.f32 %v3550_v15, %v3477_v28 }
0x1f07   :  { %v3562_v56 = vmul.f32 0.70710677, %v3556_v53  ;;  %v3560_v38 = vmul.f32 0.5, %v3556_v53 }
0x1f08   :  { %v3561_v58 = vmul.f32 0.70710677, %v3551_v55  ;;  %v3559_v17 = vmul.f32 0.5, %v3551_v55  ;;  %v3796_v55 = vld [vmem:[%s5698_s2] sm:$0xff] }
0x1f09   :  { %4864 = verf.f32 %v3562_v56 }
0x1f0a   :  { %4866 = verf.f32 %v3561_v58  ;;  %v3792_v58 = vld [vmem:[%s5705_s9 + $0x30] sm:$0xff] }
0x1f13   :  { %v4865_v59 = vpop.eup %4864 }
0x1f14   :  { %v4867_v60 = vpop.eup %4866  ;;  %v3566_v50 = vadd.f32 1.0, %v4865_v59  ;;  %v3793_v59 = vld [vmem:[%s5705_s9 + $0x38] sm:$0xff] }
0x1f15   :  { %v3565_v40 = vadd.f32 1.0, %v4867_v60  ;;  %v4748_v60 = vpack.c.bf16 %v3793_v59, %v3792_v58 }
0x1f16   :  { %v3568_v61 = vmul.f32 %v3566_v50, %v3560_v38  ;;  %v3794_v50 = vld [vmem:[%s5705_s9 + $0x40] sm:$0xff] }
0x1f17   :  { %v3567_v54 = vmul.f32 %v3565_v40, %v3559_v17  ;;  %v3795_v17 = vld [vmem:[%s5705_s9 + $0x48] sm:$0xff] }
0x1f18   :  { %v4752_v40 = vpack.c.bf16 %v3795_v17, %v3794_v50 }
0x1f19   :  { %4615 = vmatprep.mubr.msk.f32.mxu0 %vm1777_vm5, %v3567_v54 }
0x1f1a   :  { %4616 = vmatmul.mubr.msk.f32.vlgmr.msra.gmra.mrb[36].mxu0 %vm1777_vm5, %v3568_v61  ;;  %v5646_v61 = vld [vmem:[%s5704_s8] sm:$0xff] }
0x1f1b   :  { %4655 = vmatprep.mubr.msk.f32.mxu0 %vm4906_vm1, %v4905_v41 }
0x1fed   :  { %v4617_v21 = vpop.f32.mrb[36].mxu0 }
0x1fee   :  { %v3660_v30 = vadd.f32 %v4617_v21, %v3581_v62  ;;  %v3654_v0 = vpop.f32.mrb[37].mxu0 }
0x1fef   :  { %v3655_v45 = vadd.f32 %v3654_v0, %v3581_v62  ;;  %v3801_v62 = vrot.slane %v5646_v61, %v5251_v8 }
0x1ff0   :  { %v3664_v63 = vadd.f32 %v3660_v30, %v3468_v24 }
0x1ff1   :  { %v3663_v43 = vadd.f32 %v3655_v45, %v3467_v22  ;;  %v3791_v22 = vld [vmem:[%s5705_s9 + $0x28] sm:$0xff] }
0x1ff2   :  { %v3668_v39 = vsel %vm42_vm0, %v3664_v63, 0.0  ;;  %v4744_v23 = vpack.c.bf16 %v3791_v22, %v3790_v19  ;;  %v4757_v19 = vpack.c.bf16 %v4026_v20, %v4025_v13  ;;  %v4028_v22 = vld [vmem:[%s5706_s10 + $0x18] sm:$0xff]  ;;  %s4922_s10 = smov [#allocation2]  }
0x1ff3   :  { %3669 = vadd.xlane.f32.xlu0 %v3668_v39  ;;  %v3665_v32 = vsel %vm42_vm0, %v3663_v43, 0.0  ;;  %v3888_v39 = vrot.slane %v5646_v61, %v5285_v35  ;;  %s4113_s12 = sshll.u32 %s4922_s10, 4  ;;  %s4114_s12 = int_to_ptr.vmem [resolvable:$true] %s4113_s12 }
0x1ff4   :  { %3666 = vadd.xlane.f32.xlu1 %v3665_v32  ;;  %4745 = vmatprep.subr.bf16.mxu1 %v4744_v23  ;;  %s4881_s14 = scalar_lea.vmem %s4114_s12, 32  ;;  %p4886_p1 = scmp.lt.s32.totalorder %s4114_s12, %s4114_s12 }
0x1ff5   :  { %4758 = vmatpush3.bf16.msra.mxu0 %v4757_v19  ;;  %p4882_p0 = scmp.ne.s32.totalorder %s4114_s12, %s4881_s14  ;;  %p4887_p2 = scmp.lt.s32.totalorder %s4881_s14, %s4881_s14 }
0x1ff6   :  { %4759 = vmatprep.subr.bf16.mxu0 %v4921_v14 }
0x1ff7   :  { %p4888_p3 = por %p4887_p2, %p4886_p1 }
0x1ff9   :  { %p4889_p4 = pnand %p4888_p3, %p4882_p0 }
0x2080   :  { %v3670_v1 = vpop.xlane.xlu0 %3669 }
0x2081   :  { %v3672_v4 = vmul.f32 0.03125, %v3670_v1  ;;  %v3667_v5 = vpop.xlane.xlu1 %3666 }
0x2082   :  { %v3671_v46 = vmul.f32 0.03125, %v3667_v5 }
0x2083   :  { %v3674_v41 = vsub.f32 %v3664_v63, %v3672_v4 }
0x2084   :  { %v3673_v2 = vsub.f32 %v3663_v43, %v3671_v46 }
0x2085   :  { %v3676_v6 = vmul.f32 %v3674_v41, %v3674_v41 }
0x2086   :  { %v3675_v3 = vmul.f32 %v3673_v2, %v3673_v2 }
0x2087   :  { %v3680_v9 = vsel %vm42_vm0, %v3676_v6, 0.0 }
0x2088   :  { %3681 = vadd.xlane.f32.xlu0 %v3680_v9  ;;  %v3677_v10 = vsel %vm42_vm0, %v3675_v3, 0.0 }
0x2089   :  { %3678 = vadd.xlane.f32.xlu1 %v3677_v10 }
0x2115   :  { %v3682_v24 = vpop.xlane.xlu0 %3681 }
0x2116   :  { %v3684_v29 = vmul.f32 0.03125, %v3682_v24  ;;  %v3679_v31 = vpop.xlane.xlu1 %3678 }
0x2117   :  { %v3683_v33 = vmul.f32 0.03125, %v3679_v31 }
0x2118   :  { %v3686_v34 = vadd.f32 1e-12, %v3684_v29 }
0x2119   :  { %v3685_v36 = vadd.f32 1e-12, %v3683_v33 }
0x211a   :  { %4868 = vrsqrt.f32 %v3686_v34 }
0x211b   :  { %4870 = vrsqrt.f32 %v3685_v36 }
0x2124   :  { %v4869_v37 = vpop.eup %4868 }
0x2125   :  { %v4871_v42 = vpop.eup %4870  ;;  %v3690_v44 = vmul.f32 %v4869_v37, %v3674_v41 }
0x2126   :  { %v3689_v49 = vmul.f32 %v4871_v42, %v3673_v2 }
0x2127   :  { %v3696_v51 = vmul.f32 %v3694_v18, %v3690_v44  ;;  %v4005_v44 = vrot.slane %v5646_v61, %v5316_v25 }
0x2128   :  { %v3695_v28 = vmul.f32 %v3694_v18, %v3689_v49  ;;  %v3999_v18 = vrot.slane %v5646_v61, %v5294_v57 }
0x2129   :  { %v3702_v52 = vadd.f32 %v3700_v48, %v3696_v51 }
0x212a   :  { %v3701_v53 = vadd.f32 %v3700_v48, %v3695_v28  ;;  %v3715_v28 = vrot.slane %v5646_v61, %v5248_v7 }
0x212b   :  { %v3704_v15 = vrot.slane %v3702_v52, 7 }
0x212d   :  { %v3707_v56 = vsel %vm3706_vm6, %v3701_v53, %v3704_v15 }
0x212e   :  { %4627 = vmatmul.mubr.msk.f32.vlgmr.msra.gmra.mrb[42].mxu1 %vm42_vm0, %v3707_v56 }
0x212f   :  { %4747 = vmatpush3.bf16.msra.mxu1 %v4744_v23  ;;  %4633 = vmatprep.mubr.msk.f32.mxu1 %vm1531_vm4, %v3796_v55  ;;  %v4760_v23 = vpack.c.bf16 %v4028_v22, %v4027_v16 }
0x2130   :  { %4749 = vmatprep.subr.bf16.mxu1 %v4748_v60 }
0x2131   :  { %4761 = vmatpush3.bf16.msra.mxu0 %v4760_v23 }
0x2132   :  { %4634 = vmatmul.mubr.msk.f32.vlgmr.msra.gmra.mrb[44].mxu1 %vm1531_vm4, %v3797_v26 }
0x2133   :  { %4751 = vmatpush3.bf16.msra.mxu1 %v4748_v60 }
0x2134   :  { %4753 = vmatprep.subr.bf16.mxu1 %v4752_v40 }
0x2137   :  { %4755 = vmatpush3.bf16.msra.mxu1 %v4752_v40 }
0x2201   :  { %v5641_v38 = vpop.f32.mrb[42].mxu1 }
0x2202   :  { %v4628_v54 = vpop.f32.mrb[43].mxu1  ;;  %v3786_v57 = vadd.f32 %v5641_v38, %v3715_v28  ;;  %v4032_v38 = vrot.slane %v5646_v61, %v5319_v27 }
0x2205   :  { %v4635_v21 = vpop.f32.mrb[44].mxu1 }
0x2206   :  { %v3880_v30 = vadd.f32 %v4635_v21, %v3801_v62  ;;  %v3874_v0 = vpop.f32.mrb[45].mxu1 }
0x2207   :  { %v3875_v45 = vadd.f32 %v3874_v0, %v3801_v62 }
0x2208   :  { %v3884_v43 = vmax.f32 %v3880_v30, 0.0 }
0x2209   :  { %v3883_v63 = vmax.f32 %v3875_v45, 0.0 }
0x220b   :  { %4644 = vmatprep.mubr.msk.f32.mxu1 %vm42_vm0, %v3883_v63 }
0x220c   :  { %4645 = vmatmul.mubr.msk.f32.vlgmr.msra.gmra.mrb[46].mxu1 %vm42_vm0, %v3884_v43 }
0x22df   :  { %v4646_v32 = vpop.f32.mrb[46].mxu1 }
0x22e0   :  { %v3967_v1 = vadd.f32 %v4646_v32, %v3888_v39  ;;  %v3961_v4 = vpop.f32.mrb[47].mxu1 }
0x22e1   :  { %v3962_v5 = vadd.f32 %v3961_v4, %v3888_v39 }
0x22e2   :  { %v3973_v46 = vsel %vm42_vm0, %v3967_v1, 0.0 }
0x22e3   :  { %3974 = vadd.xlane.f32.xlu1 %v3973_v46  ;;  %v3970_v8 = vsel %vm42_vm0, %v3962_v5, 0.0 }
0x22e4   :  { %3971 = vadd.xlane.f32.xlu0 %v3970_v8 }
0x2370   :  { %v3975_v41 = vpop.xlane.xlu1 %3974 }
0x2371   :  { %v3977_v2 = vmul.f32 0.03125, %v3975_v41  ;;  %v3972_v6 = vpop.xlane.xlu0 %3971 }
0x2372   :  { %v3976_v3 = vmul.f32 0.03125, %v3972_v6 }
0x2373   :  { %v3979_v9 = vsub.f32 %v3967_v1, %v3977_v2 }
0x2374   :  { %v3978_v10 = vsub.f32 %v3962_v5, %v3976_v3 }
0x2375   :  { %v3981_v47 = vmul.f32 %v3979_v9, %v3979_v9 }
0x2376   :  { %v3980_v11 = vmul.f32 %v3978_v10, %v3978_v10 }
0x2377   :  { %v3985_v35 = vsel %vm42_vm0, %v3981_v47, 0.0 }
0x2378   :  { %3986 = vadd.xlane.f32.xlu1 %v3985_v35  ;;  %v3982_v12 = vsel %vm42_vm0, %v3980_v11, 0.0 }
0x2379   :  { %3983 = vadd.xlane.f32.xlu0 %v3982_v12 }
0x2405   :  { %v3987_v24 = vpop.xlane.xlu1 %3986 }
0x2406   :  { %v3989_v29 = vmul.f32 0.03125, %v3987_v24  ;;  %v3984_v31 = vpop.xlane.xlu0 %3983 }
0x2407   :  { %v3988_v33 = vmul.f32 0.03125, %v3984_v31 }
0x2408   :  { %v3991_v34 = vadd.f32 1e-05, %v3989_v29 }
0x2409   :  { %v3990_v36 = vadd.f32 1e-05, %v3988_v33 }
0x240a   :  { %4872 = vrsqrt.f32 %v3991_v34 }
0x240b   :  { %4874 = vrsqrt.f32 %v3990_v36 }
0x240c   :  { %4876 = vtanh.f32 %v3786_v57 }
0x2414   :  { %v4873_v37 = vpop.eup %4872 }
0x2415   :  { %v4875_v42 = vpop.eup %4874  ;;  %v3995_v48 = vmul.f32 %v4873_v37, %v3979_v9 }
0x2416   :  { %v3994_v49 = vmul.f32 %v4875_v42, %v3978_v10  ;;  %v4877_v0 = vpop.eup %4876 }
0x2417   :  { %v4001_v14 = vmul.f32 %v3999_v18, %v3995_v48 }
0x2418   :  { %v4000_v51 = vmul.f32 %v3999_v18, %v3994_v49 }
0x2419   :  { %v4007_v52 = vadd.f32 %v4005_v44, %v4001_v14 }
0x241a   :  { %v4006_v53 = vadd.f32 %v4005_v44, %v4000_v51 }
0x241b   :  { %v4015_v15 = vsel %vm42_vm0, %v4007_v52, 0.0 }
0x241c   :  { %v4016_v55 = vrot.slane %v4015_v15, 4  ;;  %v4008_v56 = vsel %vm42_vm0, %v4006_v53, 0.0 }
0x241d   :  { %v4009_v26 = vrot.slane %v4008_v56, 4 }
0x241e   :  { %v4017_v58 = vadd.f32 %v4016_v55, %v4015_v15 }
0x241f   :  { %v4010_v59 = vadd.f32 %v4009_v26, %v4008_v56 }
0x2420   :  { %v4018_v25 = vrot.slane %v4017_v58, 2 }
0x2421   :  { %v4011_v60 = vrot.slane %v4010_v59, 2 }
0x2422   :  { %v4019_v50 = vadd.f32 %v4018_v25, %v4017_v58 }
0x2423   :  { %v4012_v17 = vadd.f32 %v4011_v60, %v4010_v59 }
0x2424   :  { %v4020_v40 = vrot.slane %v4019_v50, 1 }
0x2425   :  { %v4013_v54 = vrot.slane %v4012_v17, 1 }
0x2426   :  { %v4021_v7 = vadd.f32 %v4020_v40, %v4019_v50 }
0x2427   :  { %v4014_v62 = vadd.f32 %v4013_v54, %v4012_v17 }
0x2429   :  { %v4022_v21 = vsel %vm3706_vm6, %v4014_v62, %v4021_v7 }
0x242a   :  { %v4023_v30 = vmul.f32 0.125, %v4022_v21 }
0x242c   :  { %v4024_v45 = vadd.f32 %v4877_v0, %v4023_v30 }
0x242e   :  { %4656 = vmatmul.mubr.msk.f32.vlgmr.msra.gmra.mrb[38].mxu0 %vm42_vm0, %v4024_v45 }
0x2501   :  { %v4102_v63 = vpop.f32.mrb[38].mxu0 }
0x2502   :  { %v4103_v43 = vadd.f32 %v4102_v63, %v4032_v38  ;;  %v4657_v39 = vpop.f32.mrb[39].mxu0 }
0x2504   :  { %4106 = vst [vmem:[#allocation2] sm:$0x3] %v4103_v43 }
0x2505   :  { %4892 = shalt.err (!%p4889_p4)
}
0x2506   :  { %s4893_s17 = scalar_lea.hbm %s5707_s11, 32 }
0x2507   :  { %p4894_p5 = scmp.ne.s32.totalorder %s5707_s11, %s4893_s17  ;;  %p4897_p6 = scmp.lt.u32.totalorder %s4893_s17, %s5707_s11 }
0x2509   :  { %p4899_p7 = pnand %p4897_p6, %p4894_p5 }
0x250b   :  { %4902 = shalt.err (!%p4899_p7)
}
0x250c   :  { %4116 = dma.vmem_to_hbm [thread:$0]  %s4114_s12, 32, %s5707_s11, [#allocation3]  }
0x250d   :  { %4903 = dma.done.wait [#allocation3], 32  }
0x250e   :  { %4904 = vsyncadd [#allocation3], 4294967264 }
0x250f   :  { %4120 = vsyncpa [#allocation3], 1 }

</bundles_post_ra>
